<compile_context>
chip_gen: v5e
topology: v5e:2x2
jax: 0.10.0
libtpu: 0.0.40
codegen_flags: <defaults>
</compile_context>

<pallas_src>
import functools

import jax
import jax.numpy as jnp
from jax import lax
from jax.experimental import pallas as pl
from jax.experimental.pallas import tpu as pltpu

NEG = -1e9          # emission value for padded (non-existent) classes
LANE = 128          # TPU lane width -> class-axis padding target
SUB = 8             # f32 sublane minimum -> Viterbi predecessor-axis padding target
TILE_B = 16         # batch tile (small: keeps VMEM footprint tiny, many parallel grid steps)
STATS_W = 128       # lane-dense stats slab width


def _round_up(x, m):
    return ((x + m - 1) // m) * m


# ---------------------------------------------------------------------------
# Fused kernel: per batch tile
#   emissions (per-t MXU matmul) + streamed focal loss + CRF log-likelihood
#   (matrix-form forward) + Viterbi decode (shrunk predecessor axis + backtrace).
# ---------------------------------------------------------------------------
def _fused_kernel(x_ref, w_ref, b_ref, tag_ref, len_ref, trans_ref, etrans_ref,
                  stats_ref, dec_ref, bp_ref, *, gamma, c_prev):
    s, bt, _e = x_ref.shape
    cp = w_ref.shape[1]

    w = w_ref[...]                 # (E, Cp) bf16
    bias = b_ref[...]              # (1, Cp) f32  (NEG on padded classes)
    trans = trans_ref[...]         # (Cp, Cp) f32 (0 on padded entries)
    etrans = etrans_ref[...]       # (Cp, Cp) f32 = exp(trans)
    lens = len_ref[...]            # (Bt, 1) i32  (valid tokens per row; right-padded mask)
    tags = tag_ref[...]            # (Bt, S) i32

    cls = lax.broadcasted_iota(jnp.int32, (bt, cp), 1)            # class index on lanes
    t_iota = lax.broadcasted_iota(jnp.int32, (bt, s), 1)          # time index on lanes
    trans_v = trans[:c_prev, :]                                   # (c_prev, Cp)
    idx_prev = lax.broadcasted_iota(jnp.int32, (bt, c_prev, cp), 1)

    def emis_at(t):                # (Bt, Cp) f32, pad classes ~= NEG via bias
        return jnp.dot(x_ref[t], w, preferred_element_type=jnp.float32) + bias

    def tag_onehot(t):             # (Bt, Cp) f32 one-hot of gold tag at time t
        tg = jnp.sum(jnp.where(t_iota == t, tags, 0), axis=1, keepdims=True)
        return (cls == tg).astype(jnp.float32)

    def focal_at(emis_t, oh_t):    # (Bt, 1) focal cost at time t (exact softmax division)
        mx = jnp.max(emis_t, axis=-1, keepdims=True)
        ex = jnp.exp(emis_t - mx)
        p = jnp.sum(oh_t * ex, axis=-1, keepdims=True) / jnp.sum(ex, axis=-1, keepdims=True)
        g = (1.0 - jnp.clip(p, 0.01, 0.99)) ** gamma
        return -g * jnp.log(p + 1e-8)

    # ---- t = 0 -------------------------------------------------------------
    emis0 = emis_at(0)
    oh0 = tag_onehot(0)
    m0 = (lens > 0).astype(jnp.float32)
    focal0 = focal_at(emis0, oh0) * m0
    num0 = jnp.sum(oh0 * emis0, axis=-1, keepdims=True)

    # ---- fused time loop: focal + CRF gold + CRF forward + Viterbi ----------
    def body(t, carry):
        alpha, num, oh_prev, vscore, fsum = carry
        emis_t = emis_at(t)
        oh_cur = tag_onehot(t)
        m_t = (lens > t).astype(jnp.float32)          # (Bt,1); right-padded mask assumption
        keep = m_t > 0.0

        # focal loss (streamed)
        fsum = fsum + focal_at(emis_t, oh_cur) * m_t

        # CRF gold score: trans[tag_{t-1}, tag_t] + emis[t, tag_t]
        trans_row = jnp.dot(oh_prev, trans, preferred_element_type=jnp.float32)
        trans_sel = jnp.sum(trans_row * oh_cur, axis=-1, keepdims=True)
        emit_sel = jnp.sum(oh_cur * emis_t, axis=-1, keepdims=True)
        num = num + m_t * (trans_sel + emit_sel)
        oh_prev = jnp.where(keep, oh_cur, oh_prev)    # hold gold tag across masked steps

        # CRF forward recurrence, matrix form on the MXU
        amax = jnp.max(alpha, axis=-1, keepdims=True)
        pa = jnp.exp(alpha - amax)
        new_alpha = (jnp.log(jnp.dot(pa, etrans, preferred_element_type=jnp.float32))
                     + amax + emis_t)
        alpha = jnp.where(keep, new_alpha, alpha)

        # Viterbi forward: predecessor axis limited to real classes (pad classes never win)
        cand = vscore[:, :c_prev, None] + trans_v[None, :, :]     # (Bt, c_prev, Cp)
        best = jnp.max(cand, axis=1)                              # (Bt, Cp)
        bp = jnp.min(jnp.where(cand == best[:, None, :], idx_prev, c_prev),
                     axis=1).astype(jnp.int32)
        bp_ref[t] = jnp.where(keep, bp, cls)                      # identity bp if masked
        vscore = jnp.where(keep, best + emis_t, vscore)

        return alpha, num, oh_prev, vscore, fsum

    alpha, num, _oh, vscore, fsum = lax.fori_loop(
        1, s, body, (emis0, num0, oh0, emis0, focal0))

    # ---- CRF log-likelihood -------------------------------------------------
    am = jnp.max(alpha, axis=-1, keepdims=True)
    log_z = jnp.log(jnp.sum(jnp.exp(alpha - am), axis=-1, keepdims=True)) + am
    llh = num - log_z                                             # (Bt,1)

    # ---- focal masked time-average per batch row ----------------------------
    focal_cost = fsum / jnp.maximum(lens.astype(jnp.float32), 1.0)

    # ---- Viterbi termination + backtrace ------------------------------------
    best_score = jnp.max(vscore, axis=-1, keepdims=True)          # (Bt,1)
    last_tag = jnp.min(jnp.where(vscore == best_score, cls, cp),
                       axis=-1, keepdims=True).astype(jnp.int32)

    lane_s = lax.broadcasted_iota(jnp.int32, (bt, STATS_W), 1)
    stats_ref[...] = (jnp.where(lane_s == 0, focal_cost, 0.0)
                      + jnp.where(lane_s == 1, llh, 0.0)
                      + jnp.where(lane_s == 2, best_score, 0.0))

    dec_iota = lax.broadcasted_iota(jnp.int32, (bt, s), 1)
    dec0 = jnp.where(dec_iota == s - 1, last_tag, 0)              # (Bt,S) i32
    cur0 = (cls == last_tag).astype(jnp.int32)                    # (Bt,Cp)

    def back_body(i, carry):
        cur_oh, dec = carry
        t = s - 1 - i
        bp_t = bp_ref[t]                                          # (Bt,Cp) i32
        prev = jnp.sum(cur_oh * bp_t, axis=-1, keepdims=True)     # (Bt,1)
        dec = jnp.where(dec_iota == t - 1, prev, dec)
        return (cls == prev).astype(jnp.int32), dec

    _, dec = lax.fori_loop(0, s - 1, back_body, (cur0, dec0))
    dec_ref[...] = dec


# ---------------------------------------------------------------------------
# myModel.forward equivalent (loss_type = 'FC_FT_CRF', eval mode)
# ---------------------------------------------------------------------------
def my_model_forward(params, token_ids_sb, tag_matrix_sb, mask_matrix_sb, gamma=2.0):
    s, b = token_ids_sb.shape
    emb = params["embedding"]                     # (V, E) bf16
    e = emb.shape[1]
    w = params["fc_w"]
    bvec = params["fc_b"]
    trans = params["crf_trans"]
    c = w.shape[1]
    c_pad = _round_up(c, LANE)
    c_prev = _round_up(c, SUB)

    # TODO(synk): stand-in for bert_model.work(data)[0]; F.dropout is identity in eval mode.
    seq_rep = jnp.take(emb.astype(jnp.bfloat16), token_ids_sb, axis=0)   # (S, B, E) bf16

    tile_b = TILE_B
    b_pad = _round_up(b, tile_b)
    if b_pad != b:
        pad = b_pad - b
        seq_rep = jnp.pad(seq_rep, ((0, 0), (0, pad), (0, 0)))
        tags_p = jnp.pad(tag_matrix_sb, ((0, 0), (0, pad)))
        mask_p = jnp.pad(mask_matrix_sb, ((0, 0), (0, pad)))
    else:
        tags_p, mask_p = tag_matrix_sb, mask_matrix_sb

    tags_bt = jnp.transpose(tags_p).astype(jnp.int32)                    # (B_pad, S)
    lens = jnp.sum(mask_p, axis=0).astype(jnp.int32).reshape(b_pad, 1)   # (B_pad, 1)

    w_p = jnp.pad(w, ((0, 0), (0, c_pad - c))).astype(jnp.bfloat16)
    b_p = jnp.pad(bvec.reshape(1, c).astype(jnp.float32),
                  ((0, 0), (0, c_pad - c)), constant_values=NEG)
    trans_p = jnp.pad(trans.astype(jnp.float32), ((0, c_pad - c), (0, c_pad - c)))
    etrans_p = jnp.exp(trans_p)                                          # hoisted exp(T)

    stats, dec = pl.pallas_call(
        functools.partial(_fused_kernel, gamma=gamma, c_prev=c_prev),
        out_shape=(
            jax.ShapeDtypeStruct((b_pad, STATS_W), jnp.float32),   # [focal, llh, score, 0...]
            jax.ShapeDtypeStruct((b_pad, s), jnp.int32),           # decoded tags (batch-first)
        ),
        grid=(b_pad // tile_b,),
        in_specs=[
            pl.BlockSpec((s, tile_b, e), lambda j: (0, j, 0)),     # activations (bf16)
            pl.BlockSpec((e, c_pad), lambda j: (0, 0)),            # fc weight (bf16)
            pl.BlockSpec((1, c_pad), lambda j: (0, 0)),            # fc bias (+NEG pads)
            pl.BlockSpec((tile_b, s), lambda j: (j, 0)),           # tags (batch-major)
            pl.BlockSpec((tile_b, 1), lambda j: (j, 0)),           # lengths
            pl.BlockSpec((c_pad, c_pad), lambda j: (0, 0)),        # transitions
            pl.BlockSpec((c_pad, c_pad), lambda j: (0, 0)),        # exp(transitions)
        ],
        out_specs=(
            pl.BlockSpec((tile_b, STATS_W), lambda j: (j, 0)),
            pl.BlockSpec((tile_b, s), lambda j: (j, 0)),
        ),
        scratch_shapes=[pltpu.VMEM((s, tile_b, c_pad), jnp.int32)],      # backpointers
        compiler_params=pltpu.CompilerParams(
            dimension_semantics=("parallel",),
            vmem_limit_bytes=32 * 1024 * 1024),
    )(seq_rep, w_p, b_p, tags_bt, lens, trans_p, etrans_p)

    focal = stats[:b, 0]
    llh = stats[:b, 1]
    decode_scores = stats[:b, 2]
    decode_result = dec[:b, :]

    loss_ft_fc = jnp.mean(focal)                                   # torch.mean(cost)
    loss_crf_fc = -(jnp.sum(llh) / jnp.sum(mask_matrix_sb))        # reduction='token_mean'
    loss = loss_ft_fc + loss_crf_fc
    return decode_result, loss, loss_crf_fc, loss_ft_fc, token_ids_sb, decode_scores


if __name__ == "__main__":
    # small, module-consistent sizes
    batch_size = 2
    max_len = 7
    seq_len = max_len + 1          # as in forward(): seq_len = max_len + 1
    embedding_size = 32
    num_class = 8
    vocab_size = 64

    key = jax.random.PRNGKey(0)
    k_emb, k_w, k_b, k_tr, k_tok, k_tag = jax.random.split(key, 6)

    params = {
        "embedding": (0.02 * jax.random.normal(
            k_emb, (vocab_size, embedding_size), jnp.float32)).astype(jnp.bfloat16),
        "fc_w": jax.random.normal(k_w, (embedding_size, num_class), jnp.float32)
                / jnp.sqrt(embedding_size),
        "fc_b": 0.01 * jax.random.normal(k_b, (num_class,), jnp.float32),
        "crf_trans": 0.1 * jax.random.normal(k_tr, (num_class, num_class), jnp.float32),
    }

    # time-major inputs [seq_len, batch] (post-`.t_()` layout of the PyTorch module)
    token_ids = jax.random.randint(k_tok, (seq_len, batch_size), 0, vocab_size,
                                   dtype=jnp.int32)
    tag_matrix = jax.random.randint(k_tag, (seq_len, batch_size), 0, num_class,
                                    dtype=jnp.int32)
    lengths = jnp.array([8, 5], dtype=jnp.int32)          # valid tokens per instance
    mask_matrix = (jnp.arange(seq_len)[:, None] < lengths[None, :]).astype(jnp.float32)

    fwd = jax.jit(my_model_forward)
    out = fwd(params, token_ids, tag_matrix, mask_matrix)
    out = jax.block_until_ready(out)
    decode_result, loss, loss_crf, loss_ft, input_data, decode_scores = out

    assert decode_result.shape == (batch_size, seq_len)
    assert bool(jnp.all((decode_result >= 0) & (decode_result < num_class)))
    assert decode_scores.shape == (batch_size,)
    assert jnp.isfinite(loss) and jnp.isfinite(loss_crf) and jnp.isfinite(loss_ft)
    print("KERNEL_OK")
</pallas_src>

<mosaic_0001>
module attributes {stable_mosaic.version = 11 : i64} {
  func.func @_fused_kernel(%arg0: i32, %arg1: memref<8x16x32xbf16, #tpu.memory_space<vmem>>, %arg2: memref<32x128xbf16, #tpu.memory_space<vmem>>, %arg3: memref<1x128xf32, #tpu.memory_space<vmem>>, %arg4: memref<16x8xi32, #tpu.memory_space<vmem>>, %arg5: memref<16x1xi32, #tpu.memory_space<vmem>>, %arg6: memref<128x128xf32, #tpu.memory_space<vmem>>, %arg7: memref<128x128xf32, #tpu.memory_space<vmem>>, %arg8: memref<16x128xf32, #tpu.memory_space<vmem>>, %arg9: memref<16x8xi32, #tpu.memory_space<vmem>>, %arg10: memref<8x16x128xi32, #tpu.memory_space<vmem>>) attributes {dimension_semantics = [#tpu.dimension_semantics<parallel>], iteration_bounds = array<i64: 1>, scalar_prefetch = 0 : i64, scratch_operands = 1 : i64, tpu.core_type = #tpu.core_type<tc>, window_params = [{transform_indices = @transform_0, window_bounds = array<i64: 8, 16, 32>}, {pipeline_mode = #tpu.pipeline_mode<synchronous>, transform_indices = @transform_1, window_bounds = array<i64: 32, 128>}, {pipeline_mode = #tpu.pipeline_mode<synchronous>, transform_indices = @transform_2, window_bounds = array<i64: 1, 128>}, {transform_indices = @transform_3, window_bounds = array<i64: 16, 8>}, {transform_indices = @transform_4, window_bounds = array<i64: 16, 1>}, {pipeline_mode = #tpu.pipeline_mode<synchronous>, transform_indices = @transform_5, window_bounds = array<i64: 128, 128>}, {pipeline_mode = #tpu.pipeline_mode<synchronous>, transform_indices = @transform_6, window_bounds = array<i64: 128, 128>}, {transform_indices = @transform_7, window_bounds = array<i64: 16, 128>}, {transform_indices = @transform_8, window_bounds = array<i64: 16, 8>}]} {
    %c0 = arith.constant 0 : index
    %c0_0 = arith.constant 0 : index
    %0 = vector.load %arg2[%c0, %c0_0] : memref<32x128xbf16, #tpu.memory_space<vmem>>, vector<32x128xbf16>
    %c0_1 = arith.constant 0 : index
    %c0_2 = arith.constant 0 : index
    %1 = vector.load %arg3[%c0_1, %c0_2] : memref<1x128xf32, #tpu.memory_space<vmem>>, vector<1x128xf32>
    %c0_3 = arith.constant 0 : index
    %c0_4 = arith.constant 0 : index
    %2 = vector.load %arg6[%c0_3, %c0_4] : memref<128x128xf32, #tpu.memory_space<vmem>>, vector<128x128xf32>
    %c0_5 = arith.constant 0 : index
    %c0_6 = arith.constant 0 : index
    %3 = vector.load %arg7[%c0_5, %c0_6] : memref<128x128xf32, #tpu.memory_space<vmem>>, vector<128x128xf32>
    %c0_7 = arith.constant 0 : index
    %c0_8 = arith.constant 0 : index
    %4 = vector.load %arg5[%c0_7, %c0_8] : memref<16x1xi32, #tpu.memory_space<vmem>>, vector<16x1xi32>
    %c0_9 = arith.constant 0 : index
    %c0_10 = arith.constant 0 : index
    %5 = vector.load %arg4[%c0_9, %c0_10] : memref<16x8xi32, #tpu.memory_space<vmem>>, vector<16x8xi32>
    %6 = tpu.iota {dimensions = array<i32: 1>} : vector<16x128xi32>
    %7 = tpu.iota {dimensions = array<i32: 1>} : vector<16x8xi32>
    %8 = vector.extract_strided_slice %2 {offsets = [0, 0], sizes = [8, 128], strides = [1, 1]} : vector<128x128xf32> to vector<8x128xf32>
    %9 = tpu.iota {dimensions = array<i32: 1>} : vector<16x8x128xi32>
    %c0_11 = arith.constant 0 : index
    %c0_12 = arith.constant 0 : index
    %c0_13 = arith.constant 0 : index
    %10 = vector.load %arg1[%c0_11, %c0_12, %c0_13] : memref<8x16x32xbf16, #tpu.memory_space<vmem>>, vector<1x16x32xbf16>
    %11 = vector.shape_cast %10 : vector<1x16x32xbf16> to vector<16x32xbf16>
    %cst = arith.constant dense<0.000000e+00> : vector<16x128xf32>
    %12 = tpu.matmul %11, %0, %cst {dimension_numbers = #tpu.dot_dimension_numbers<[1], [0], [0], [1], [0, 0, 1, 1], [], []>} : vector<16x32xbf16>, vector<32x128xbf16>, vector<16x128xf32> -> vector<16x128xf32>
    %13 = vector.broadcast %1 : vector<1x128xf32> to vector<16x128xf32>
    %14 = arith.addf %12, %13 : vector<16x128xf32>
    %c0_i32 = arith.constant 0 : i32
    %15 = vector.broadcast %c0_i32 : i32 to vector<16x8xi32>
    %16 = arith.cmpi eq, %7, %15 : vector<16x8xi32>
    %c0_i32_14 = arith.constant 0 : i32
    %17 = vector.broadcast %c0_i32_14 : i32 to vector<16x8xi32>
    %18 = arith.select %16, %5, %17 : vector<16x8xi1>, vector<16x8xi32>
    %cst_15 = arith.constant dense<0> : vector<16xi32>
    %19 = vector.multi_reduction <add>, %18, %cst_15 [1] : vector<16x8xi32> to vector<16xi32>
    %20 = vector.shape_cast %19 : vector<16xi32> to vector<16x1xi32>
    %21 = vector.broadcast %20 : vector<16x1xi32> to vector<16x128xi32>
    %22 = arith.cmpi eq, %6, %21 : vector<16x128xi32>
    %23 = arith.extui %22 : vector<16x128xi1> to vector<16x128xi32>
    %24 = arith.sitofp %23 : vector<16x128xi32> to vector<16x128xf32>
    %c0_i32_16 = arith.constant 0 : i32
    %25 = vector.broadcast %c0_i32_16 : i32 to vector<16x1xi32>
    %26 = arith.cmpi sgt, %4, %25 : vector<16x1xi32>
    %27 = arith.extui %26 : vector<16x1xi1> to vector<16x1xi32>
    %28 = arith.sitofp %27 : vector<16x1xi32> to vector<16x1xf32>
    %cst_17 = arith.constant dense<0xFF800000> : vector<16xf32>
    %29 = vector.multi_reduction <maximumf>, %14, %cst_17 [1] : vector<16x128xf32> to vector<16xf32>
    %30 = vector.shape_cast %29 : vector<16xf32> to vector<16x1xf32>
    %31 = vector.broadcast %30 : vector<16x1xf32> to vector<16x128xf32>
    %32 = arith.subf %14, %31 : vector<16x128xf32>
    %33 = math.exp %32 : vector<16x128xf32>
    %34 = arith.mulf %24, %33 : vector<16x128xf32>
    %cst_18 = arith.constant dense<0.000000e+00> : vector<16xf32>
    %35 = vector.multi_reduction <add>, %34, %cst_18 [1] : vector<16x128xf32> to vector<16xf32>
    %36 = vector.shape_cast %35 : vector<16xf32> to vector<16x1xf32>
    %cst_19 = arith.constant dense<0.000000e+00> : vector<16xf32>
    %37 = vector.multi_reduction <add>, %33, %cst_19 [1] : vector<16x128xf32> to vector<16xf32>
    %38 = vector.shape_cast %37 : vector<16xf32> to vector<16x1xf32>
    %39 = arith.divf %36, %38 : vector<16x1xf32>
    %cst_20 = arith.constant 0.00999999977 : f32
    %cst_21 = arith.constant 9.900000e-01 : f32
    %40 = vector.broadcast %cst_20 : f32 to vector<16x1xf32>
    %41 = arith.maximumf %40, %39 : vector<16x1xf32>
    %42 = vector.broadcast %cst_21 : f32 to vector<16x1xf32>
    %43 = arith.minimumf %42, %41 : vector<16x1xf32>
    %cst_22 = arith.constant 1.000000e+00 : f32
    %44 = vector.broadcast %cst_22 : f32 to vector<16x1xf32>
    %45 = arith.subf %44, %43 : vector<16x1xf32>
    %cst_23 = arith.constant 2.000000e+00 : f32
    %46 = vector.broadcast %cst_23 : f32 to vector<16x1xf32>
    %47 = math.powf %45, %46 : vector<16x1xf32>
    %cst_24 = arith.constant 0.000000e+00 : f32
    %48 = vector.broadcast %cst_24 : f32 to vector<16x1xf32>
    %49 = arith.subf %48, %47 : vector<16x1xf32>
    %cst_25 = arith.constant 9.99999993E-9 : f32
    %50 = vector.broadcast %cst_25 : f32 to vector<16x1xf32>
    %51 = arith.addf %39, %50 : vector<16x1xf32>
    %52 = math.log %51 : vector<16x1xf32>
    %53 = arith.mulf %49, %52 : vector<16x1xf32>
    %54 = arith.mulf %53, %28 : vector<16x1xf32>
    %55 = arith.mulf %24, %14 : vector<16x128xf32>
    %cst_26 = arith.constant dense<0.000000e+00> : vector<16xf32>
    %56 = vector.multi_reduction <add>, %55, %cst_26 [1] : vector<16x128xf32> to vector<16xf32>
    %57 = vector.shape_cast %56 : vector<16xf32> to vector<16x1xf32>
    %c1_i32 = arith.constant 1 : i32
    %c7_i32 = arith.constant 7 : i32
    %58 = arith.addi %c1_i32, %c7_i32 : i32
    %c1_i32_27 = arith.constant 1 : i32
    %59:5 = scf.for %arg11 = %c1_i32 to %58 step %c1_i32_27 iter_args(%arg12 = %14, %arg13 = %57, %arg14 = %24, %arg15 = %14, %arg16 = %54) -> (vector<16x128xf32>, vector<16x1xf32>, vector<16x128xf32>, vector<16x128xf32>, vector<16x1xf32>)  : i32 {
      %117 = arith.index_cast %arg11 : i32 to index
      %c0_49 = arith.constant 0 : index
      %c0_50 = arith.constant 0 : index
      %118 = vector.load %arg1[%117, %c0_49, %c0_50] : memref<8x16x32xbf16, #tpu.memory_space<vmem>>, vector<1x16x32xbf16>
      %119 = vector.shape_cast %118 : vector<1x16x32xbf16> to vector<16x32xbf16>
      %cst_51 = arith.constant dense<0.000000e+00> : vector<16x128xf32>
      %120 = tpu.matmul %119, %0, %cst_51 {dimension_numbers = #tpu.dot_dimension_numbers<[1], [0], [0], [1], [0, 0, 1, 1], [], []>} : vector<16x32xbf16>, vector<32x128xbf16>, vector<16x128xf32> -> vector<16x128xf32>
      %121 = vector.broadcast %1 : vector<1x128xf32> to vector<16x128xf32>
      %122 = arith.addf %120, %121 : vector<16x128xf32>
      %123 = vector.broadcast %arg11 : i32 to vector<16x8xi32>
      %124 = arith.cmpi eq, %7, %123 : vector<16x8xi32>
      %c0_i32_52 = arith.constant 0 : i32
      %125 = vector.broadcast %c0_i32_52 : i32 to vector<16x8xi32>
      %126 = arith.select %124, %5, %125 : vector<16x8xi1>, vector<16x8xi32>
      %cst_53 = arith.constant dense<0> : vector<16xi32>
      %127 = vector.multi_reduction <add>, %126, %cst_53 [1] : vector<16x8xi32> to vector<16xi32>
      %128 = vector.shape_cast %127 : vector<16xi32> to vector<16x1xi32>
      %129 = vector.broadcast %128 : vector<16x1xi32> to vector<16x128xi32>
      %130 = arith.cmpi eq, %6, %129 : vector<16x128xi32>
      %131 = arith.extui %130 : vector<16x128xi1> to vector<16x128xi32>
      %132 = arith.sitofp %131 : vector<16x128xi32> to vector<16x128xf32>
      %133 = vector.broadcast %arg11 : i32 to vector<16x1xi32>
      %134 = arith.cmpi sgt, %4, %133 : vector<16x1xi32>
      %135 = arith.extui %134 : vector<16x1xi1> to vector<16x1xi32>
      %136 = arith.sitofp %135 : vector<16x1xi32> to vector<16x1xf32>
      %cst_54 = arith.constant 0.000000e+00 : f32
      %137 = vector.broadcast %cst_54 : f32 to vector<16x1xf32>
      %138 = arith.cmpf ogt, %136, %137 : vector<16x1xf32>
      %cst_55 = arith.constant dense<0xFF800000> : vector<16xf32>
      %139 = vector.multi_reduction <maximumf>, %122, %cst_55 [1] : vector<16x128xf32> to vector<16xf32>
      %140 = vector.shape_cast %139 : vector<16xf32> to vector<16x1xf32>
      %141 = vector.broadcast %140 : vector<16x1xf32> to vector<16x128xf32>
      %142 = arith.subf %122, %141 : vector<16x128xf32>
      %143 = math.exp %142 : vector<16x128xf32>
      %144 = arith.mulf %132, %143 : vector<16x128xf32>
      %cst_56 = arith.constant dense<0.000000e+00> : vector<16xf32>
      %145 = vector.multi_reduction <add>, %144, %cst_56 [1] : vector<16x128xf32> to vector<16xf32>
      %146 = vector.shape_cast %145 : vector<16xf32> to vector<16x1xf32>
      %cst_57 = arith.constant dense<0.000000e+00> : vector<16xf32>
      %147 = vector.multi_reduction <add>, %143, %cst_57 [1] : vector<16x128xf32> to vector<16xf32>
      %148 = vector.shape_cast %147 : vector<16xf32> to vector<16x1xf32>
      %149 = arith.divf %146, %148 : vector<16x1xf32>
      %cst_58 = arith.constant 0.00999999977 : f32
      %cst_59 = arith.constant 9.900000e-01 : f32
      %150 = vector.broadcast %cst_58 : f32 to vector<16x1xf32>
      %151 = arith.maximumf %150, %149 : vector<16x1xf32>
      %152 = vector.broadcast %cst_59 : f32 to vector<16x1xf32>
      %153 = arith.minimumf %152, %151 : vector<16x1xf32>
      %cst_60 = arith.constant 1.000000e+00 : f32
      %154 = vector.broadcast %cst_60 : f32 to vector<16x1xf32>
      %155 = arith.subf %154, %153 : vector<16x1xf32>
      %cst_61 = arith.constant 2.000000e+00 : f32
      %156 = vector.broadcast %cst_61 : f32 to vector<16x1xf32>
      %157 = math.powf %155, %156 : vector<16x1xf32>
      %cst_62 = arith.constant 0.000000e+00 : f32
      %158 = vector.broadcast %cst_62 : f32 to vector<16x1xf32>
      %159 = arith.subf %158, %157 : vector<16x1xf32>
      %cst_63 = arith.constant 9.99999993E-9 : f32
      %160 = vector.broadcast %cst_63 : f32 to vector<16x1xf32>
      %161 = arith.addf %149, %160 : vector<16x1xf32>
      %162 = math.log %161 : vector<16x1xf32>
      %163 = arith.mulf %159, %162 : vector<16x1xf32>
      %164 = arith.mulf %163, %136 : vector<16x1xf32>
      %165 = arith.addf %arg16, %164 : vector<16x1xf32>
      %cst_64 = arith.constant dense<0.000000e+00> : vector<16x128xf32>
      %166 = tpu.matmul %arg14, %2, %cst_64 {dimension_numbers = #tpu.dot_dimension_numbers<[1], [0], [0], [1], [0, 0, 1, 1], [], []>} : vector<16x128xf32>, vector<128x128xf32>, vector<16x128xf32> -> vector<16x128xf32>
      %167 = arith.mulf %166, %132 : vector<16x128xf32>
      %cst_65 = arith.constant dense<0.000000e+00> : vector<16xf32>
      %168 = vector.multi_reduction <add>, %167, %cst_65 [1] : vector<16x128xf32> to vector<16xf32>
      %169 = vector.shape_cast %168 : vector<16xf32> to vector<16x1xf32>
      %170 = arith.mulf %132, %122 : vector<16x128xf32>
      %cst_66 = arith.constant dense<0.000000e+00> : vector<16xf32>
      %171 = vector.multi_reduction <add>, %170, %cst_66 [1] : vector<16x128xf32> to vector<16xf32>
      %172 = vector.shape_cast %171 : vector<16xf32> to vector<16x1xf32>
      %173 = arith.addf %169, %172 : vector<16x1xf32>
      %174 = arith.mulf %136, %173 : vector<16x1xf32>
      %175 = arith.addf %arg13, %174 : vector<16x1xf32>
      %176 = vector.shape_cast %138 : vector<16x1xi1> to vector<16x1xi1>
      %177 = vector.broadcast %176 : vector<16x1xi1> to vector<16x128xi1>
      %178 = arith.select %177, %132, %arg14 : vector<16x128xi1>, vector<16x128xf32>
      %cst_67 = arith.constant dense<0xFF800000> : vector<16xf32>
      %179 = vector.multi_reduction <maximumf>, %arg12, %cst_67 [1] : vector<16x128xf32> to vector<16xf32>
      %180 = vector.shape_cast %179 : vector<16xf32> to vector<16x1xf32>
      %181 = vector.broadcast %180 : vector<16x1xf32> to vector<16x128xf32>
      %182 = arith.subf %arg12, %181 : vector<16x128xf32>
      %183 = math.exp %182 : vector<16x128xf32>
      %cst_68 = arith.constant dense<0.000000e+00> : vector<16x128xf32>
      %184 = tpu.matmul %183, %3, %cst_68 {dimension_numbers = #tpu.dot_dimension_numbers<[1], [0], [0], [1], [0, 0, 1, 1], [], []>} : vector<16x128xf32>, vector<128x128xf32>, vector<16x128xf32> -> vector<16x128xf32>
      %185 = math.log %184 : vector<16x128xf32>
      %186 = vector.broadcast %180 : vector<16x1xf32> to vector<16x128xf32>
      %187 = arith.addf %185, %186 : vector<16x128xf32>
      %188 = arith.addf %187, %122 : vector<16x128xf32>
      %189 = vector.shape_cast %138 : vector<16x1xi1> to vector<16x1xi1>
      %190 = vector.broadcast %189 : vector<16x1xi1> to vector<16x128xi1>
      %191 = arith.select %190, %188, %arg12 : vector<16x128xi1>, vector<16x128xf32>
      %192 = vector.extract_strided_slice %arg15 {offsets = [0, 0], sizes = [16, 8], strides = [1, 1]} : vector<16x128xf32> to vector<16x8xf32>
      %193 = vector.shape_cast %192 : vector<16x8xf32> to vector<16x8x1xf32>
      %194 = vector.shape_cast %8 : vector<8x128xf32> to vector<1x8x128xf32>
      %195 = vector.broadcast %193 : vector<16x8x1xf32> to vector<16x8x128xf32>
      %196 = vector.broadcast %194 : vector<1x8x128xf32> to vector<16x8x128xf32>
      %197 = arith.addf %195, %196 : vector<16x8x128xf32>
      %cst_69 = arith.constant dense<0xFF800000> : vector<16x128xf32>
      %198 = vector.multi_reduction <maximumf>, %197, %cst_69 [1] : vector<16x8x128xf32> to vector<16x128xf32>
      %199 = vector.shape_cast %198 : vector<16x128xf32> to vector<16x1x128xf32>
      %200 = vector.broadcast %199 : vector<16x1x128xf32> to vector<16x8x128xf32>
      %201 = arith.cmpf oeq, %197, %200 : vector<16x8x128xf32>
      %c8_i32 = arith.constant 8 : i32
      %202 = vector.broadcast %c8_i32 : i32 to vector<16x8x128xi32>
      %203 = arith.select %201, %9, %202 : vector<16x8x128xi1>, vector<16x8x128xi32>
      %cst_70 = arith.constant dense<2147483647> : vector<16x128xi32>
      %204 = vector.multi_reduction <minsi>, %203, %cst_70 [1] : vector<16x8x128xi32> to vector<16x128xi32>
      %205 = vector.shape_cast %138 : vector<16x1xi1> to vector<16x1xi1>
      %206 = vector.broadcast %205 : vector<16x1xi1> to vector<16x128xi1>
      %207 = arith.select %206, %204, %6 : vector<16x128xi1>, vector<16x128xi32>
      %208 = arith.index_cast %arg11 : i32 to index
      %c0_71 = arith.constant 0 : index
      %c0_72 = arith.constant 0 : index
      %209 = vector.load %arg10[%208, %c0_71, %c0_72] : memref<8x16x128xi32, #tpu.memory_space<vmem>>, vector<1x16x128xi32>
      %210 = vector.shape_cast %209 : vector<1x16x128xi32> to vector<16x128xi32>
      %211 = vector.shape_cast %207 : vector<16x128xi32> to vector<1x16x128xi32>
      tpu.vector_store %arg10[%208, %c0_71, %c0_72], %211 {strides = array<i32>} : memref<8x16x128xi32, #tpu.memory_space<vmem>>, vector<1x16x128xi32>,
      %212 = arith.addf %198, %122 : vector<16x128xf32>
      %213 = vector.shape_cast %138 : vector<16x1xi1> to vector<16x1xi1>
      %214 = vector.broadcast %213 : vector<16x1xi1> to vector<16x128xi1>
      %215 = arith.select %214, %212, %arg15 : vector<16x128xi1>, vector<16x128xf32>
      scf.yield %191, %175, %178, %215, %165 : vector<16x128xf32>, vector<16x1xf32>, vector<16x128xf32>, vector<16x128xf32>, vector<16x1xf32>
    }
    %c7_i32_28 = arith.constant 7 : i32
    %cst_29 = arith.constant dense<0xFF800000> : vector<16xf32>
    %60 = vector.multi_reduction <maximumf>, %59#0, %cst_29 [1] : vector<16x128xf32> to vector<16xf32>
    %61 = vector.shape_cast %60 : vector<16xf32> to vector<16x1xf32>
    %62 = vector.broadcast %61 : vector<16x1xf32> to vector<16x128xf32>
    %63 = arith.subf %59#0, %62 : vector<16x128xf32>
    %64 = math.exp %63 : vector<16x128xf32>
    %cst_30 = arith.constant dense<0.000000e+00> : vector<16xf32>
    %65 = vector.multi_reduction <add>, %64, %cst_30 [1] : vector<16x128xf32> to vector<16xf32>
    %66 = vector.shape_cast %65 : vector<16xf32> to vector<16x1xf32>
    %67 = math.log %66 : vector<16x1xf32>
    %68 = arith.addf %67, %61 : vector<16x1xf32>
    %69 = arith.subf %59#1, %68 : vector<16x1xf32>
    %70 = arith.sitofp %4 : vector<16x1xi32> to vector<16x1xf32>
    %cst_31 = arith.constant 1.000000e+00 : f32
    %71 = vector.broadcast %cst_31 : f32 to vector<16x1xf32>
    %72 = arith.maximumf %70, %71 : vector<16x1xf32>
    %73 = arith.divf %59#4, %72 : vector<16x1xf32>
    %cst_32 = arith.constant dense<0xFF800000> : vector<16xf32>
    %74 = vector.multi_reduction <maximumf>, %59#3, %cst_32 [1] : vector<16x128xf32> to vector<16xf32>
    %75 = vector.shape_cast %74 : vector<16xf32> to vector<16x1xf32>
    %76 = vector.broadcast %75 : vector<16x1xf32> to vector<16x128xf32>
    %77 = arith.cmpf oeq, %59#3, %76 : vector<16x128xf32>
    %c128_i32 = arith.constant 128 : i32
    %78 = vector.broadcast %c128_i32 : i32 to vector<16x128xi32>
    %79 = arith.select %77, %6, %78 : vector<16x128xi1>, vector<16x128xi32>
    %cst_33 = arith.constant dense<2147483647> : vector<16xi32>
    %80 = vector.multi_reduction <minsi>, %79, %cst_33 [1] : vector<16x128xi32> to vector<16xi32>
    %81 = vector.shape_cast %80 : vector<16xi32> to vector<16x1xi32>
    %82 = tpu.iota {dimensions = array<i32: 1>} : vector<16x128xi32>
    %c0_i32_34 = arith.constant 0 : i32
    %83 = vector.broadcast %c0_i32_34 : i32 to vector<16x128xi32>
    %84 = arith.cmpi eq, %82, %83 : vector<16x128xi32>
    %cst_35 = arith.constant 0.000000e+00 : f32
    %85 = vector.shape_cast %73 : vector<16x1xf32> to vector<16x1xf32>
    %86 = vector.broadcast %85 : vector<16x1xf32> to vector<16x128xf32>
    %87 = vector.broadcast %cst_35 : f32 to vector<16x128xf32>
    %88 = arith.select %84, %86, %87 : vector<16x128xi1>, vector<16x128xf32>
    %c1_i32_36 = arith.constant 1 : i32
    %89 = vector.broadcast %c1_i32_36 : i32 to vector<16x128xi32>
    %90 = arith.cmpi eq, %82, %89 : vector<16x128xi32>
    %cst_37 = arith.constant 0.000000e+00 : f32
    %91 = vector.shape_cast %69 : vector<16x1xf32> to vector<16x1xf32>
    %92 = vector.broadcast %91 : vector<16x1xf32> to vector<16x128xf32>
    %93 = vector.broadcast %cst_37 : f32 to vector<16x128xf32>
    %94 = arith.select %90, %92, %93 : vector<16x128xi1>, vector<16x128xf32>
    %95 = arith.addf %88, %94 : vector<16x128xf32>
    %c2_i32 = arith.constant 2 : i32
    %96 = vector.broadcast %c2_i32 : i32 to vector<16x128xi32>
    %97 = arith.cmpi eq, %82, %96 : vector<16x128xi32>
    %cst_38 = arith.constant 0.000000e+00 : f32
    %98 = vector.shape_cast %75 : vector<16x1xf32> to vector<16x1xf32>
    %99 = vector.broadcast %98 : vector<16x1xf32> to vector<16x128xf32>
    %100 = vector.broadcast %cst_38 : f32 to vector<16x128xf32>
    %101 = arith.select %97, %99, %100 : vector<16x128xi1>, vector<16x128xf32>
    %102 = arith.addf %95, %101 : vector<16x128xf32>
    %c0_39 = arith.constant 0 : index
    %c0_40 = arith.constant 0 : index
    %103 = vector.load %arg8[%c0_39, %c0_40] : memref<16x128xf32, #tpu.memory_space<vmem>>, vector<16x128xf32>
    tpu.vector_store %arg8[%c0_39, %c0_40], %102 {strides = array<i32>} : memref<16x128xf32, #tpu.memory_space<vmem>>, vector<16x128xf32>,
    %104 = tpu.iota {dimensions = array<i32: 1>} : vector<16x8xi32>
    %c7_i32_41 = arith.constant 7 : i32
    %105 = vector.broadcast %c7_i32_41 : i32 to vector<16x8xi32>
    %106 = arith.cmpi eq, %104, %105 : vector<16x8xi32>
    %c0_i32_42 = arith.constant 0 : i32
    %107 = vector.shape_cast %81 : vector<16x1xi32> to vector<16x1xi32>
    %108 = vector.broadcast %107 : vector<16x1xi32> to vector<16x8xi32>
    %109 = vector.broadcast %c0_i32_42 : i32 to vector<16x8xi32>
    %110 = arith.select %106, %108, %109 : vector<16x8xi1>, vector<16x8xi32>
    %111 = vector.broadcast %81 : vector<16x1xi32> to vector<16x128xi32>
    %112 = arith.cmpi eq, %6, %111 : vector<16x128xi32>
    %113 = arith.extui %112 : vector<16x128xi1> to vector<16x128xi32>
    %c0_i32_43 = arith.constant 0 : i32
    %c7_i32_44 = arith.constant 7 : i32
    %114 = arith.addi %c0_i32_43, %c7_i32_44 : i32
    %c1_i32_45 = arith.constant 1 : i32
    %115:2 = scf.for %arg11 = %c0_i32_43 to %114 step %c1_i32_45 iter_args(%arg12 = %113, %arg13 = %110) -> (vector<16x128xi32>, vector<16x8xi32>)  : i32 {
      %c7_i32_49 = arith.constant 7 : i32
      %117 = arith.subi %c7_i32_49, %arg11 : i32
      %118 = arith.index_cast %117 : i32 to index
      %c0_50 = arith.constant 0 : index
      %c0_51 = arith.constant 0 : index
      %119 = vector.load %arg10[%118, %c0_50, %c0_51] : memref<8x16x128xi32, #tpu.memory_space<vmem>>, vector<1x16x128xi32>
      %120 = vector.shape_cast %119 : vector<1x16x128xi32> to vector<16x128xi32>
      %121 = arith.muli %arg12, %120 : vector<16x128xi32>
      %cst_52 = arith.constant dense<0> : vector<16xi32>
      %122 = vector.multi_reduction <add>, %121, %cst_52 [1] : vector<16x128xi32> to vector<16xi32>
      %123 = vector.shape_cast %122 : vector<16xi32> to vector<16x1xi32>
      %c1_i32_53 = arith.constant 1 : i32
      %124 = arith.subi %117, %c1_i32_53 : i32
      %125 = vector.broadcast %124 : i32 to vector<16x8xi32>
      %126 = arith.cmpi eq, %104, %125 : vector<16x8xi32>
      %127 = vector.shape_cast %123 : vector<16x1xi32> to vector<16x1xi32>
      %128 = vector.broadcast %127 : vector<16x1xi32> to vector<16x8xi32>
      %129 = arith.select %126, %128, %arg13 : vector<16x8xi1>, vector<16x8xi32>
      %130 = vector.broadcast %123 : vector<16x1xi32> to vector<16x128xi32>
      %131 = arith.cmpi eq, %6, %130 : vector<16x128xi32>
      %132 = arith.extui %131 : vector<16x128xi1> to vector<16x128xi32>
      scf.yield %132, %129 : vector<16x128xi32>, vector<16x8xi32>
    }
    %c7_i32_46 = arith.constant 7 : i32
    %c0_47 = arith.constant 0 : index
    %c0_48 = arith.constant 0 : index
    %116 = vector.load %arg9[%c0_47, %c0_48] : memref<16x8xi32, #tpu.memory_space<vmem>>, vector<16x8xi32>
    tpu.vector_store %arg9[%c0_47, %c0_48], %115#1 {strides = array<i32>} : memref<16x8xi32, #tpu.memory_space<vmem>>, vector<16x8xi32>,
    return
  }
  func.func @transform_0(%arg0: i32) -> (i32, i32, i32) {
    %c0_i32 = arith.constant 0 : i32
    %c0_i32_0 = arith.constant 0 : i32
    %c0_i32_1 = arith.constant 0 : i32
    return %c0_i32, %arg0, %c0_i32_0 : i32, i32, i32
  }
  func.func @transform_1(%arg0: i32) -> (i32, i32) {
    %c0_i32 = arith.constant 0 : i32
    %c0_i32_0 = arith.constant 0 : i32
    %c0_i32_1 = arith.constant 0 : i32
    return %c0_i32, %c0_i32_0 : i32, i32
  }
  func.func @transform_2(%arg0: i32) -> (i32, i32) {
    %c0_i32 = arith.constant 0 : i32
    %c0_i32_0 = arith.constant 0 : i32
    %c0_i32_1 = arith.constant 0 : i32
    return %c0_i32, %c0_i32_0 : i32, i32
  }
  func.func @transform_3(%arg0: i32) -> (i32, i32) {
    %c0_i32 = arith.constant 0 : i32
    %c0_i32_0 = arith.constant 0 : i32
    return %arg0, %c0_i32 : i32, i32
  }
  func.func @transform_4(%arg0: i32) -> (i32, i32) {
    %c0_i32 = arith.constant 0 : i32
    %c0_i32_0 = arith.constant 0 : i32
    return %arg0, %c0_i32 : i32, i32
  }
  func.func @transform_5(%arg0: i32) -> (i32, i32) {
    %c0_i32 = arith.constant 0 : i32
    %c0_i32_0 = arith.constant 0 : i32
    %c0_i32_1 = arith.constant 0 : i32
    return %c0_i32, %c0_i32_0 : i32, i32
  }
  func.func @transform_6(%arg0: i32) -> (i32, i32) {
    %c0_i32 = arith.constant 0 : i32
    %c0_i32_0 = arith.constant 0 : i32
    %c0_i32_1 = arith.constant 0 : i32
    return %c0_i32, %c0_i32_0 : i32, i32
  }
  func.func @transform_7(%arg0: i32) -> (i32, i32) {
    %c0_i32 = arith.constant 0 : i32
    %c0_i32_0 = arith.constant 0 : i32
    return %arg0, %c0_i32 : i32, i32
  }
  func.func @transform_8(%arg0: i32) -> (i32, i32) {
    %c0_i32 = arith.constant 0 : i32
    %c0_i32_0 = arith.constant 0 : i32
    return %arg0, %c0_i32 : i32, i32
  }
}

</mosaic_0001>

<bundles_post_ra>
// kernel: my_model_forward.1
= control target key start
LH: loop header
LB: loop body
LE: loop exit
PB: predicated region body
PF: predicated region fallthrough
CT: control target
= control target key end

     0   :  { %v70_v0 = vlaneseq  ;;  %vm2568_vm1 = vcmask 64512   ;;  %vm2567_vm2 = vcmask 261120   ;;  %s2532_s1 = inlined_call_operand.vmem [shape: bf16[32,128], index: 1, kind: input, shape index: {}]   ;;  %s2533_s5 = inlined_call_operand.vmem [shape: f32[128,128], index: 5, kind: input, shape index: {}]   ;;  %s2534_s7 = inlined_call_operand.vmem [shape: f32[16,128], index: 7, kind: output, shape index: {0}]   ;;  %s2535_s8 = inlined_call_operand.vmem [shape: s32[16,8], index: 8, kind: output, shape index: {1}]   ;;  %s2536_s6 = inlined_call_operand.vmem [shape: f32[128,128], index: 6, kind: input, shape index: {}]   ;;  %s2537_s3 = inlined_call_operand.vmem [shape: s32[16,8], index: 3, kind: input, shape index: {}]   ;;  %s2538_s0 = inlined_call_operand.vmem [shape: bf16[8,16,32], index: 0, kind: input, shape index: {}]   ;;  %s2539_s2 = inlined_call_operand.vmem [shape: f32[1,128], index: 2, kind: input, shape index: {}]   ;;  %s2540_s4 = inlined_call_operand.vmem [shape: s32[16,1], index: 4, kind: input, shape index: {}]  }
   0x1   :  { %v1683_v1 = vld [vmem:[%s2532_s1 + $0x8] sm:$0xff]  ;;  %v1688_v2 = vld [vmem:[%s2533_s5] sm:$0xff]  ;;  %v1698_v4 = vld [vmem:[%s2533_s5 + $0x10] sm:$0xff] }
   0x2   :  { %2570 = vst [vmem:[#allocation3_spill] sm:$0xff] %v1683_v1  ;;  %v1693_v3 = vld [vmem:[%s2533_s5 + $0x8] sm:$0xff]  ;;  %v1703_v5 = vld [vmem:[%s2533_s5 + $0x18] sm:$0xff]  ;;  %v1708_v6 = vld [vmem:[%s2533_s5 + $0x20] sm:$0xff]  ;;  %v1710_v7 = vshrl.u32 %v70_v0, 7  ;;  %106 = vmatpush.bf16.msra.mxu0 %v1683_v1  ;;  %v1773_v20 = vand.u32 127, %v70_v0 }
   0x3   :  { %2571 = vst [vmem:[#allocation4_spill] sm:$0xff] %v1693_v3  ;;  %v1715_v8 = vld [vmem:[%s2533_s5 + $0x28] sm:$0xff]  ;;  %v1720_v9 = vld [vmem:[%s2533_s5 + $0x30] sm:$0xff]  ;;  %v1725_v10 = vld [vmem:[%s2533_s5 + $0x38] sm:$0xff] }
   0x4   :  { %2572 = vst [vmem:[#allocation5_spill] sm:$0xff] %v1698_v4  ;;  %v1731_v11 = vld [vmem:[%s2533_s5 + $0x40] sm:$0xff]  ;;  %v1736_v12 = vld [vmem:[%s2533_s5 + $0x48] sm:$0xff]  ;;  %v1741_v13 = vld [vmem:[%s2533_s5 + $0x50] sm:$0xff]  ;;  %vm2569_vm0 = vcmp.eq.s32.totalorder %v1773_v20, 0 }
   0x5   :  { %2573 = vst [vmem:[#allocation6_spill] sm:$0xff] %v1703_v5  ;;  %v1746_v14 = vld [vmem:[%s2533_s5 + $0x58] sm:$0xff]  ;;  %v1751_v15 = vld [vmem:[%s2533_s5 + $0x60] sm:$0xff]  ;;  %v1756_v16 = vld [vmem:[%s2533_s5 + $0x68] sm:$0xff] }
   0x6   :  { %2574 = vst [vmem:[#allocation7_spill] sm:$0xff] %v1708_v6  ;;  %v1761_v17 = vld [vmem:[%s2533_s5 + $0x70] sm:$0xff]  ;;  %v1766_v18 = vld [vmem:[%s2533_s5 + $0x78] sm:$0xff]  ;;  %v1771_v19 = vld [vmem:[%s2536_s6] sm:$0xff] }
   0x7   :  { %2575 = vst [vmem:[#allocation8_spill] sm:$0xff] %v1715_v8  ;;  %v1778_v21 = vld [vmem:[%s2536_s6 + $0x8] sm:$0xff]  ;;  %v1783_v22 = vld [vmem:[%s2536_s6 + $0x10] sm:$0xff]  ;;  %v1788_v23 = vld [vmem:[%s2536_s6 + $0x18] sm:$0xff] }
   0x8   :  { %2576 = vst [vmem:[#allocation9_spill] sm:$0xff] %v1720_v9  ;;  %v1793_v24 = vld [vmem:[%s2536_s6 + $0x20] sm:$0xff]  ;;  %v1798_v25 = vld [vmem:[%s2536_s6 + $0x28] sm:$0xff]  ;;  %v1803_v26 = vld [vmem:[%s2536_s6 + $0x30] sm:$0xff] }
   0x9   :  { %2577 = vst [vmem:[#allocation10_spill] sm:$0xff] %v1725_v10  ;;  %v1808_v27 = vld [vmem:[%s2536_s6 + $0x38] sm:$0xff]  ;;  %v1813_v28 = vld [vmem:[%s2536_s6 + $0x40] sm:$0xff]  ;;  %v1818_v29 = vld [vmem:[%s2536_s6 + $0x48] sm:$0xff] }
   0xa   :  { %2578 = vst [vmem:[#allocation11_spill] sm:$0xff] %v1731_v11  ;;  %v1823_v30 = vld [vmem:[%s2536_s6 + $0x50] sm:$0xff]  ;;  %v1828_v31 = vld [vmem:[%s2536_s6 + $0x58] sm:$0xff]  ;;  %v1833_v32 = vld [vmem:[%s2536_s6 + $0x60] sm:$0xff] }
   0xb   :  { %2579 = vst [vmem:[#allocation12_spill] sm:$0xff] %v1736_v12  ;;  %v1839_v33 = vld [vmem:[%s2536_s6 + $0x68] sm:$0xff]  ;;  %v1844_v34 = vld [vmem:[%s2536_s6 + $0x70] sm:$0xff]  ;;  %v1849_v35 = vld [vmem:[%s2536_s6 + $0x78] sm:$0xff] }
   0xc   :  { %2580 = vst [vmem:[#allocation13_spill] sm:$0xff] %v1741_v13  ;;  %v1854_v36 = vld [vmem:[%s2532_s1] sm:$0xff]  ;;  %v1870_v40 = vld [vmem:[%s2537_s3 + $0x8] sm:$0xff] }
   0xd   :  { %2581 = vst [vmem:[#allocation14_spill] sm:$0xff] %v1746_v14  ;;  %v1859_v37 = vld [vmem:[%s2537_s3] sm:$0xff]  ;;  %107 = vmatpush.bf16.msra.mxu0 %v1854_v36  ;;  %v116_v42 = vsel %vm2569_vm0, %v1870_v40, 0 }
   0xe   :  { %2582 = vst [vmem:[#allocation15_spill] sm:$0xff] %v1751_v15  ;;  %v1293_v38 = vld [vmem:[%s2538_s0] sm:$0xff]  ;;  %v115_v39 = vsel %vm2569_vm0, %v1859_v37, 0  ;;  %v131_v45 = vsel %vm2568_vm1, %v116_v42, 0 }
   0xf   :  { %2583 = vst [vmem:[#allocation16_spill] sm:$0xff] %v1756_v16  ;;  %v118_v41 = vsel %vm2568_vm1, %v115_v39, 0  ;;  %v133_v48 = vshrl.u32 %v131_v45, 16  ;;  %v132_v49 = vand.u32 65535, %v131_v45  ;;  %v1882_v52 = vld [vmem:[%s2539_s2] ss:$0 sm:$0xff] }
  0x10   :  { %2584 = vst [vmem:[#allocation17_spill] sm:$0xff] %v1761_v17  ;;  %v120_v43 = vshrl.u32 %v118_v41, 16  ;;  %v119_v44 = vand.u32 65535, %v118_v41  ;;  %1273 = vmatmul.msk.bf16.vlgmr.msra.gmra.mxu0 %vm2567_vm2, %v1293_v38 }
  0x11   :  { %2585 = vst [vmem:[#allocation18_spill] sm:$0xff] %v1766_v18  ;;  %v135_v50 = vcvt.s32.f32 %v133_v48  ;;  %v134_v51 = vcvt.s32.f32 %v132_v49 }
  0x12   :  { %2586 = vst [vmem:[#allocation19_spill] sm:$0xff] %v1771_v19  ;;  %v122_v46 = vcvt.s32.f32 %v120_v43  ;;  %v121_v47 = vcvt.s32.f32 %v119_v44 }
  0x13   :  { %2587 = vst [vmem:[#allocation20_spill] sm:$0xff] %v1778_v21 }
  0x14   :  { %2588 = vst [vmem:[#allocation21_spill] sm:$0xff] %v1783_v22  ;;  %125 = vadd.xlane.f32.xlu1 %v122_v46  ;;  %123 = vadd.xlane.f32.xlu2 %v121_v47 }
  0x15   :  { %2589 = vst [vmem:[#allocation22_spill] sm:$0xff] %v1788_v23 }
  0x16   :  { %2590 = vst [vmem:[#allocation23_spill] sm:$0xff] %v1793_v24 }
  0x17   :  { %2591 = vst [vmem:[#allocation24_spill] sm:$0xff] %v1798_v25 }
  0x18   :  { %2592 = vst [vmem:[#allocation25_spill] sm:$0xff] %v1803_v26 }
  0x19   :  { %2593 = vst [vmem:[#allocation26_spill] sm:$0xff] %v1808_v27 }
  0x1a   :  { %2594 = vst [vmem:[#allocation27_spill] sm:$0xff] %v1813_v28 }
  0x1b   :  { %2595 = vst [vmem:[#allocation28_spill] sm:$0xff] %v1818_v29 }
  0x1c   :  { %2596 = vst [vmem:[#allocation29_spill] sm:$0xff] %v1823_v30  ;;  %138 = vadd.xlane.f32.xlu1 %v135_v50  ;;  %136 = vadd.xlane.f32.xlu2 %v134_v51  ;;  %v2541_v50 = vmov 0.0  }
  0x1d   :  { %2597 = vst [vmem:[#allocation30_spill] sm:$0xff] %v1828_v31 }
  0x1e   :  { %2598 = vst [vmem:[#allocation31_spill] sm:$0xff] %v1833_v32 }
  0x1f   :  { %2599 = vst [vmem:[#allocation32_spill] sm:$0xff] %v1839_v33 }
  0x20   :  { %2600 = vst [vmem:[#allocation33_spill] sm:$0xff] %v1844_v34 }
  0x21   :  { %2601 = vst [vmem:[#allocation34_spill] sm:$0xff] %v1849_v35 }
  0x22   :  { %2602 = vst [vmem:[#allocation35_spill] sm:$0xff] %v1854_v36 }
  0x23   :  { %2603 = vst [vmem:[#allocation36_spill] sm:$0xff] %v1859_v37 }
  0x24   :  { %2604 = vst [vmem:[#allocation37_spill] sm:$0xff] %v1870_v40 }
  0x25   :  { %2605 = vst [vmem:[#allocation38_spill] sm:$0xff] %v1882_v52 }
  0x87   :  { %v126_v57 = vpop.xlane.xlu1 %125  ;;  %v124_v58 = vpop.xlane.xlu2 %123 }
  0x88   :  { %v128_v59 = vcvt.f32.s32 %v126_v57  ;;  %v127_v62 = vcvt.f32.s32 %v124_v58 }
  0x8a   :  { %v129_v61 = vshll.u32 %v128_v59, 16 }
  0x8c   :  { %v130_v42 = vadd.s32 %v129_v61, %v127_v62 }
  0x8d   :  { %v109_v53 = vpop.f32.mrf.mxu0 }
  0x8e   :  { %v1885_v54 = vadd.f32 %v1882_v52, %v109_v53   ;;  %vm144_vm3 = vcmp.eq.s32.totalorder %v1773_v20, %v130_v42 }
  0x8f   :  { %v139_v60 = vpop.xlane.xlu1 %138  ;;  %v137_v39 = vpop.xlane.xlu2 %136  ;;  %v1896_v51 = vsel %vm144_vm3, 1.0, %v2541_v50  }
  0x90   :  { %156 = vmax.xlane.f32.xlu0 %v1885_v54  ;;  %v141_v38 = vcvt.f32.s32 %v139_v60  ;;  %v140_v44 = vcvt.f32.s32 %v137_v39  ;;  %v226_v60 = vmul.f32 %v1896_v51, %v1885_v54 }
  0x92   :  { %v142_v43 = vshll.u32 %v141_v38, 16 }
  0x94   :  { %v143_v47 = vadd.s32 %v142_v43, %v140_v44 }
  0x95   :  { %v111_v55 = vpop.f32.mrf.mxu0 }
  0x96   :  { %v1889_v56 = vadd.f32 %v1882_v52, %v111_v55   ;;  %vm145_vm4 = vcmp.eq.s32.totalorder %v1773_v20, %v143_v47 }
  0x97   :  { %v1901_v55 = vsel %vm145_vm4, 1.0, %v2541_v50  }
  0x98   :  { %158 = vmax.xlane.f32.xlu0 %v1889_v56  ;;  %v227_v58 = vmul.f32 %v1901_v55, %v1889_v56 }
 0x103   :  { %v157_v63 = vpop.xlane.xlu0 %156 }
 0x104   :  { %v160_v0 = vsub.f32 %v1885_v54, %v157_v63 }
 0x106   :  { %v162_v41 = vmul.f32 1.442695, %v160_v0 }
 0x108   :  { %1450 = vpow2.f32 %v162_v41 }
 0x10b   :  { %v159_v45 = vpop.xlane.xlu0 %158 }
 0x10c   :  { %v161_v46 = vsub.f32 %v1889_v56, %v159_v45 }
 0x10e   :  { %v1451_v48 = vpop.eup %1450  ;;  %v164_v49 = vmul.f32 1.442695, %v161_v46 }
 0x10f   :  { %172 = vadd.xlane.f32.xlu0 %v1451_v48  ;;  %v166_v53 = vmul.f32 %v1451_v48, %v1896_v51 }
 0x110   :  { %1452 = vpow2.f32 %v164_v49 }
 0x111   :  { %168 = vadd.xlane.f32.xlu2 %v166_v53 }
 0x116   :  { %v1453_v57 = vpop.eup %1452 }
 0x117   :  { %174 = vadd.xlane.f32.xlu1 %v1453_v57  ;;  %v167_v59 = vmul.f32 %v1453_v57, %v1901_v55 }
 0x119   :  { %230 = vadd.xlane.f32.xlu2 %v227_v58  ;;  %170 = vadd.xlane.f32.xlu0 %v167_v59 }
 0x11f   :  { %228 = vadd.xlane.f32.xlu1 %v226_v60 }
 0x182   :  { %v173_v61 = vpop.xlane.xlu0 %172 }
 0x183   :  { %1454 = vrcp.f32 %v173_v61  ;;  %v187_v42 = vand.u32 2147483648, %v173_v61  ;;  %v185_v44 = vand.u32 2147483647, %v173_v61  ;;  %vm181_vm6 = vweird.f32 %v173_v61 }
 0x184   :  { %v169_v62 = vpop.xlane.xlu2 %168 }
 0x185   :  { %v188_v47 = vor.u32 1.1754944e-38, %v187_v42  ;;  %vm186_vm8 = vcmp.eq.f32.partialorder %v185_v44, 8.507059e+37 }
 0x189   :  { %v1455_v63 = vpop.eup %1454 }
 0x18a   :  { %v177_v0 = vmul.f32 %v1455_v63, %v173_v61  ;;  %v175_v38 = vpop.xlane.xlu1 %174  ;;  %vm182_vm5 = vweird.f32 %v1455_v63 }
 0x18b   :  { %1456 = vrcp.f32 %v175_v38  ;;  %vm183_vm7 = vmor %vm181_vm6, %vm182_vm5  ;;  %v200_v60 = vand.u32 2147483647, %v175_v38  ;;  %vm196_vm10 = vweird.f32 %v175_v38 }
 0x18c   :  { %v178_v39 = vsub.f32 1.0, %v177_v0  ;;  %v1908_v41 = vpop.xlane.xlu2 %230   ;;  %v202_v0 = vand.u32 2147483648, %v175_v38 }
 0x18d   :  { %vm201_vm12 = vcmp.eq.f32.partialorder %v200_v60, 8.507059e+37 }
 0x18e   :  { %v179_v43 = vmul.f32 %v1455_v63, %v178_v39  ;;  %v203_v61 = vor.u32 1.1754944e-38, %v202_v0 }
 0x190   :  { %v180_v45 = vadd.f32 %v1455_v63, %v179_v43 }
 0x191   :  { %v1457_v46 = vpop.eup %1456 }
 0x192   :  { %v184_v48 = vsel %vm183_vm7, %v1455_v63, %v180_v45  ;;  %v192_v49 = vmul.f32 %v1457_v46, %v175_v38  ;;  %v229_v53 = vpop.xlane.xlu1 %228   ;;  %vm197_vm9 = vweird.f32 %v1457_v46  ;;  %v1913_v63 = vld [vmem:[%s2540_s4] sm:$0xff]  ;;  %v171_v45 = vpop.xlane.xlu0 %170 }
 0x193   :  { %v189_v57 = vsel %vm186_vm8, %v188_v47, %v184_v48  ;;  %vm198_vm11 = vmor %vm196_vm10, %vm197_vm9  ;;  %vm150_vm13 = vcmp.gt.s32.totalorder %v1913_v63, 0 }
 0x194   :  { %v190_v58 = vmul.f32 %v189_v57, %v169_v62  ;;  %v193_v59 = vsub.f32 1.0, %v192_v49  ;;  %v2606_v57 = vmov 0.0  }
 0x196   :  { %v206_v50 = vmax.f32 %v190_v58, 0.01  ;;  %v216_v52 = vadd.f32 1e-08, %v190_v58  ;;  %v194_v19 = vmul.f32 %v1457_v46, %v193_v59  ;;  %v1276_v58 = vsel %vm150_vm13, 1.0, %v2606_v57 }
 0x198   :  { %v208_v39 = vmin.f32 %v206_v50, 0.99  ;;  %1458 = vlog2.f32 %v216_v52  ;;  %v195_v43 = vadd.f32 %v1457_v46, %v194_v19 }
 0x19a   :  { %v210_v42 = vsub.f32 1.0, %v208_v39  ;;  %v199_v62 = vsel %vm198_vm11, %v1457_v46, %v195_v43  ;;  %v1920_v46 = vld [vmem:[%s2540_s4 + $0x8] sm:$0xff]  ;;  %s1951_s4 = smov 1  }
 0x19b   :  { %v204_v44 = vsel %vm201_vm12, %v203_v61, %v199_v62  ;;  %vm151_vm14 = vcmp.gt.s32.totalorder %v1920_v46, 0 }
 0x19c   :  { %v1312_v47 = vmul.f32 %v210_v42, %v210_v42  ;;  %v205_v48 = vmul.f32 %v204_v44, %v171_v45  ;;  %v1277_v44 = vsel %vm151_vm14, 1.0, %v2606_v57 }
 0x19e   :  { %v1459_v50 = vpop.eup %1458  ;;  %v214_v52 = vsub.f32 0.0, %v1312_v47  ;;  %v207_v19 = vmax.f32 %v205_v48, 0.01  ;;  %v217_v38 = vadd.f32 1e-08, %v205_v48  ;;  %v2607_v48 = vmov %v1889_v56 }
 0x19f   :  { %v219_v49 = vmul.f32 0.6931472, %v1459_v50  ;;  %v2608_v50 = vmov %v1885_v54 }
 0x1a0   :  { %v209_v59 = vmin.f32 %v207_v19, 0.99  ;;  %1460 = vlog2.f32 %v217_v38 }
 0x1a1   :  { %v222_v0 = vmul.f32 %v219_v49, %v214_v52 }
 0x1a2   :  { %v211_v60 = vsub.f32 1.0, %v209_v59 }
 0x1a3   :  { %v224_v39 = vmul.f32 %v1276_v58, %v222_v0  }
 0x1a4   :  { %v1313_v43 = vmul.f32 %v211_v60, %v211_v60 }
 0x1a6   :  { %v1461_v61 = vpop.eup %1460  ;;  %v215_v42 = vsub.f32 0.0, %v1313_v43 }
 0x1a7   :  { %v221_v62 = vmul.f32 0.6931472, %v1461_v61 }
 0x1a9   :  { %v223_v45 = vmul.f32 %v221_v62, %v215_v42 }
 0x1ab   :  { %v225_v47 = vmul.f32 %v1277_v44, %v223_v45  }
 0x1ac LB: > { %v2609_v18 = vld [vmem:[#allocation18_spill] sm:$0xff]  ;;  %v2610_v17 = vld [vmem:[#allocation17_spill] sm:$0xff]  ;;  %v2611_v16 = vld [vmem:[#allocation16_spill] sm:$0xff]  ;;  %1464 = vset.pattern.permute.xlu0 %v1710_v7  ;;  %s1294_s13 = sshll.u32 %s1608_s4, 3  ;;  %v1994_v52 = vstv %s1608_s4  ;;  %vm2629_vm1 = vcmask 64512   ;;  %vm2631_vm2 = vcmask 261120   ;;  %v1580_v50 = vphi %v2608_v50, %v2680_v50   ;;  %v1576_v48 = vphi %v2607_v48, %v2679_v48   ;;  %v1572_v39 = vphi %v224_v39, %v2678_v39   ;;  %v1568_v47 = vphi %v225_v47, %v2677_v47   ;;  %s1608_s4 = sphi %s1951_s4, %s237_s4   ;;  %v1604_v54 = vphi %v1885_v54, %v2684_v54   ;;  %v1600_v56 = vphi %v1889_v56, %v2683_v56   ;;  %v1596_v53 = vphi %v229_v53, %v2682_v53   ;;  %v1592_v41 = vphi %v1908_v41, %v2681_v41   ;;  %v1588_v51 = vphi %v1896_v51, %v2133_v51   ;;  %v1584_v55 = vphi %v1901_v55, %v2112_v55  }
 0x1ad   : > { %v2612_v15 = vld [vmem:[#allocation15_spill] sm:$0xff]  ;;  %v2613_v14 = vld [vmem:[#allocation14_spill] sm:$0xff]  ;;  %v2614_v13 = vld [vmem:[#allocation13_spill] sm:$0xff]  ;;  %391 = vmatpush.msra.mxu1 %v2609_v18  ;;  %1296 = vmatpush.msra.mxu3 %v2609_v18  ;;  %s250_s16 = scalar_lea.vmem %s2538_s0, %s1294_s13  ;;  %vm276_vm15 = vcmp.eq.s32.totalorder %v1773_v20, %v1994_v52  ;;  %v1631_v62 = vmov 0   ;;  %vm312_vm3 = vcmp.gt.s32.totalorder %v1920_v46, %v1994_v52  ;;  %vm311_vm4 = vcmp.gt.s32.totalorder %v1913_v63, %v1994_v52  ;;  %s1289_s17 = sshll.u32 %s1608_s4, 4 }
 0x1ae   : > { %v2615_v12 = vld [vmem:[#allocation12_spill] sm:$0xff]  ;;  %v2616_v11 = vld [vmem:[#allocation11_spill] sm:$0xff]  ;;  %v2617_v10 = vld [vmem:[#allocation10_spill] sm:$0xff]  ;;  %444 = vmax.xlane.f32.xlu0 %v1604_v54  ;;  %1463 = vset.pattern.permute.xlu2 %v1631_v62  ;;  %s911_s18 = scalar_lea.vmem [#allocation2], %s1289_s17  ;;  %s237_s4 = sadd.s32 1, %s1608_s4  }
 0x1af   : > { %v2618_v9 = vld [vmem:[#allocation9_spill] sm:$0xff]  ;;  %v2619_v8 = vld [vmem:[#allocation8_spill] sm:$0xff]  ;;  %v2620_v6 = vld [vmem:[#allocation7_spill] sm:$0xff]  ;;  %392 = vmatpush.msra.mxu1 %v2610_v17  ;;  %1297 = vmatpush.msra.mxu3 %v2610_v17  ;;  %p234_p0 = scmp.ge.s32.totalorder %s237_s4, 8  }
 0x1b0   : > { %v2621_v5 = vld [vmem:[#allocation6_spill] sm:$0xff]  ;;  %v2622_v4 = vld [vmem:[#allocation5_spill] sm:$0xff]  ;;  %v2623_v3 = vld [vmem:[#allocation4_spill] sm:$0xff]  ;;  %1462 = vset.pattern.permute.xlu1 %v1631_v62  ;;  %s2511_s22 = smov (%p234_p0), 0  }
 0x1b1   : > { %v2624_v1 = vld [vmem:[#allocation3_spill] sm:$0xff]  ;;  %v2625_v35 = vld [vmem:[#allocation34_spill] sm:$0xff]  ;;  %393 = vmatpush.msra.mxu1 %v2611_v16  ;;  %v2627_v40 = vld [vmem:[#allocation37_spill] sm:$0xff]  ;;  %1298 = vmatpush.msra.mxu3 %v2611_v16 }
 0x1b2   : > { %267 = vmatpush.bf16.msra.mxu0 %v2624_v1  ;;  %454 = vmatpush.msra.mxu2 %v2625_v35  ;;  %v2626_v36 = vld [vmem:[#allocation35_spill] sm:$0xff]  ;;  %v278_v38 = vsel %vm276_vm15, %v2627_v40, 0  ;;  %v2628_v37 = vld [vmem:[#allocation36_spill] sm:$0xff]  ;;  %v2630_v34 = vld [vmem:[#allocation33_spill] sm:$0xff] }
 0x1b3   : > { %v1295_v19 = vld [vmem:[%s250_s16] sm:$0xff]  ;;  %v277_v49 = vsel %vm276_vm15, %v2628_v37, 0  ;;  %v292_v57 = vsel %vm2629_vm1, %v278_v38, 0  ;;  %394 = vmatpush.msra.mxu1 %v2612_v15  ;;  %1299 = vmatpush.msra.mxu3 %v2612_v15  ;;  %v2632_v33 = vld [vmem:[#allocation32_spill] sm:$0xff]  ;;  %v2634_v31 = vld [vmem:[#allocation30_spill] sm:$0xff]  ;;  %v2545_v38 = vmov 0.0  }
 0x1b4   : > { %v279_v58 = vsel %vm2629_vm1, %v277_v49, 0  ;;  %455 = vmatpush.msra.mxu2 %v2630_v34  ;;  %v293_v59 = vand.u32 65535, %v292_v57  ;;  %v294_v61 = vshrl.u32 %v292_v57, 16  ;;  %v2633_v32 = vld [vmem:[#allocation31_spill] sm:$0xff]  ;;  %v2635_v30 = vld [vmem:[#allocation29_spill] sm:$0xff]  ;;  %v2636_v29 = vld [vmem:[#allocation28_spill] sm:$0xff] }
 0x1b5   : > { %v280_v0 = vand.u32 65535, %v279_v58  ;;  %395 = vmatpush.msra.mxu1 %v2613_v14  ;;  %1300 = vmatpush.msra.mxu3 %v2613_v14  ;;  %v281_v42 = vshrl.u32 %v279_v58, 16  ;;  %v2637_v28 = vld [vmem:[#allocation27_spill] sm:$0xff]  ;;  %v2638_v27 = vld [vmem:[#allocation26_spill] sm:$0xff]  ;;  %v2639_v26 = vld [vmem:[#allocation25_spill] sm:$0xff]  ;;  %v2056_v49 = vsel %vm312_vm3, 1.0, %v2545_v38 }
 0x1b6   : > { %268 = vmatpush.bf16.msra.mxu0 %v2626_v36  ;;  %v295_v60 = vcvt.s32.f32 %v293_v59  ;;  %456 = vmatpush.msra.mxu2 %v2632_v33  ;;  %v296_v44 = vcvt.s32.f32 %v294_v61  ;;  %v2640_v25 = vld [vmem:[#allocation24_spill] sm:$0xff]  ;;  %v2641_v24 = vld [vmem:[#allocation23_spill] sm:$0xff]  ;;  %v2060_v57 = vsel %vm311_vm4, 1.0, %v2545_v38  ;;  %v2642_v23 = vld [vmem:[#allocation22_spill] sm:$0xff]  ;;  %v543_v58 = vperm.slane %v1576_v48, 0 }
 0x1b7   : > { %v282_v43 = vcvt.s32.f32 %v280_v0  ;;  %396 = vmatpush.msra.mxu1 %v2614_v13  ;;  %1301 = vmatpush.msra.mxu3 %v2614_v13  ;;  %v283_v45 = vcvt.s32.f32 %v281_v42  ;;  %vm318_vm5 = vcmp.gt.f32.partialorder %v2056_v49, 0.0  ;;  %v2643_v22 = vld [vmem:[#allocation21_spill] sm:$0xff]  ;;  %vm317_vm6 = vcmp.gt.f32.partialorder %v2060_v57, 0.0  ;;  %v2644_v21 = vld [vmem:[#allocation20_spill] sm:$0xff]  ;;  %v2645_v0 = vld [vmem:[#allocation19_spill] sm:$0xff] }
 0x1b8   : > { %297 = vadd.xlane.f32.xlu2 %v295_v60  ;;  %446 = vmax.xlane.f32.xlu0 %v1600_v56  ;;  %v433_v52 = vsel %vm318_vm5, 1, %v1631_v62  ;;  %v432_v59 = vsel %vm317_vm6, 1, %v1631_v62  ;;  %v564_v60 = vperm.slane %v1576_v48, 3  ;;  %v501_v61 = vperm.slane %v1580_v50, 2 }
 0x1b9   : > { %1284 = vmatmul.msk.bf16.vlgmr.msra.gmra.mxu0 %vm2631_vm2, %v1295_v19  ;;  %284 = vadd.xlane.f32.xlu1 %v282_v43  ;;  %v487_v19 = vperm.slane %v1580_v50, 0  ;;  %v494_v43 = vperm.slane %v1580_v50, 1  ;;  %v508_v42 = vperm.slane %v1580_v50, 3  ;;  %v515_v62 = vperm.slane %v1580_v50, 4 }
 0x1ba   : > { %397 = vmatpush.msra.mxu1 %v2615_v12  ;;  %1302 = vmatpush.msra.mxu3 %v2615_v12  ;;  %vm887_vm5 = vcmask 1041409  }
 0x1bb   : > { %457 = vmatpush.msra.mxu2 %v2633_v32 }
 0x1bc   : > { %398 = vmatpush.msra.mxu1 %v2616_v11  ;;  %1303 = vmatpush.msra.mxu3 %v2616_v11 }
 0x1bd   : > { %458 = vmatpush.msra.mxu2 %v2634_v31 }
 0x1be   : > { %399 = vmatpush.msra.mxu1 %v2617_v10  ;;  %1304 = vmatpush.msra.mxu3 %v2617_v10 }
 0x1bf   : > { %459 = vmatpush.msra.mxu2 %v2635_v30 }
 0x1c0   : > { %400 = vmatpush.msra.mxu1 %v2618_v9  ;;  %299 = vadd.xlane.f32.xlu2 %v296_v44  ;;  %v522_v44 = vperm.slane %v1580_v50, 5 }
 0x1c1   : > { %1305 = vmatpush.msra.mxu3 %v2618_v9  ;;  %286 = vadd.xlane.f32.xlu1 %v283_v45  ;;  %v529_v45 = vperm.slane %v1580_v50, 6 }
 0x1c2   : > { %401 = vmatpush.msra.mxu1 %v2619_v8  ;;  %460 = vmatpush.msra.mxu2 %v2636_v29 }
 0x1c3   : > { %1306 = vmatpush.msra.mxu3 %v2619_v8 }
 0x1c4   : > { %402 = vmatpush.msra.mxu1 %v2620_v6  ;;  %461 = vmatpush.msra.mxu2 %v2637_v28 }
 0x1c5   : > { %1307 = vmatpush.msra.mxu3 %v2620_v6 }
 0x1c6   : > { %403 = vmatpush.msra.mxu1 %v2621_v5  ;;  %462 = vmatpush.msra.mxu2 %v2638_v27 }
 0x1c7   : > { %1308 = vmatpush.msra.mxu3 %v2621_v5 }
 0x1c8   : > { %404 = vmatpush.msra.mxu1 %v2622_v4  ;;  %463 = vmatpush.msra.mxu2 %v2639_v26 }
 0x1c9   : > { %1309 = vmatpush.msra.mxu3 %v2622_v4 }
 0x1ca   : > { %405 = vmatpush.msra.mxu1 %v2623_v3  ;;  %464 = vmatpush.msra.mxu2 %v2640_v25 }
 0x1cb   : > { %1310 = vmatpush.msra.mxu3 %v2623_v3 }
 0x1cc   : > { %406 = vmatpush.msra.mxu1 %v1688_v2  ;;  %492 = vperm.xlu0 %1464, %v487_v19   ;;  %v550_v19 = vperm.slane %v1576_v48, 1 }
 0x1cd   : > { %1311 = vmatpush.msra.mxu3 %v1688_v2  ;;  %407 = vmatmul.f32.vlgmr.msra.gmra.mxu1 %v1588_v51 }
 0x1ce   : > { %410 = vmatmul.f32.vlgmr.msra.gmra.mxu3 %v1584_v55  ;;  %465 = vmatpush.msra.mxu2 %v2641_v24 }
 0x1d0   : > { %466 = vmatpush.msra.mxu2 %v2642_v23 }
 0x1d2   : > { %467 = vmatpush.msra.mxu2 %v2643_v22 }
 0x1d4   : > { %468 = vmatpush.msra.mxu2 %v2644_v21  ;;  %548 = vperm.xlu0 %1464, %v543_v58   ;;  %v557_v58 = vperm.slane %v1576_v48, 2 }
 0x1d6   : > { %469 = vmatpush.msra.mxu2 %v2645_v0 }
 0x1d8   : > { %438 = vperm.xlu2 %1463, %v433_v52   ;;  %v571_v52 = vperm.slane %v1576_v48, 4 }
 0x1da   : > { %435 = vperm.xlu1 %1462, %v432_v59   ;;  %v578_v59 = vperm.slane %v1576_v48, 5 }
 0x1dc   : > { %569 = vperm.xlu0 %1464, %v564_v60  }
 0x1e0   : > { %1465 = vset.pattern.permute.xlu2 %v1710_v7 }
 0x1e2   : > { %1466 = vset.pattern.permute.xlu1 %v1710_v7 }
 0x1e8   : > { %499 = vperm.xlu2 %1465, %v494_v43  }
 0x1ea   : > { %506 = vperm.xlu1 %1466, %v501_v61  }
 0x1f0   : > { %513 = vperm.xlu2 %1465, %v508_v42  }
 0x1f2   : > { %520 = vperm.xlu1 %1466, %v515_v62  }
 0x1f8   : > { %527 = vperm.xlu2 %1465, %v522_v44  }
 0x1fa   : > { %534 = vperm.xlu1 %1466, %v529_v45  }
 0x200   : > { %555 = vperm.xlu2 %1465, %v550_v19  }
 0x202   : > { %562 = vperm.xlu1 %1466, %v557_v58  }
 0x208   : > { %576 = vperm.xlu2 %1465, %v571_v52   ;;  %v2646_v52 = vld [vmem:[#allocation38_spill] sm:$0xff] }
 0x20a   : > { %583 = vperm.xlu1 %1466, %v578_v59  }
 0x221   : > { %v2082_v0 = vpop.xlane.xlu0 %444 }
 0x222   : > { %v448_v60 = vsub.f32 %v1604_v54, %v2082_v0 }
 0x224   : > { %v450_v43 = vmul.f32 1.442695, %v448_v60 }
 0x226   : > { %1467 = vpow2.f32 %v450_v43 }
 0x22b   : > { %v298_v61 = vpop.xlane.xlu2 %297  ;;  %v2086_v62 = vpop.xlane.xlu0 %446 }
 0x22c   : > { %v285_v42 = vpop.xlane.xlu1 %284  ;;  %v1468_v44 = vpop.eup %1467  ;;  %v449_v45 = vsub.f32 %v1600_v56, %v2086_v62  ;;  %v301_v1 = vcvt.f32.s32 %v298_v61 }
 0x22d   : > { %470 = vmatmul.f32.vlgmr.msra.gmra.mxu2 %v1468_v44  ;;  %v288_v43 = vcvt.f32.s32 %v285_v42 }
 0x22e   : > { %v452_v19 = vmul.f32 1.442695, %v449_v45  ;;  %v2647_v45 = vmov 0.0  }
 0x230   : > { %1469 = vpow2.f32 %v452_v19 }
 0x233   : > { %v300_v38 = vpop.xlane.xlu2 %299 }
 0x234   : > { %v302_v3 = vcvt.f32.s32 %v300_v38  ;;  %v287_v60 = vpop.xlane.xlu1 %286 }
 0x235   : > { %v289_v4 = vcvt.f32.s32 %v287_v60 }
 0x236   : > { %v270_v58 = vpop.f32.mrf.mxu0  ;;  %v303_v5 = vshll.u32 %v302_v3, 16  ;;  %v1470_v8 = vpop.eup %1469 }
 0x237   : > { %v2091_v59 = vadd.f32 %v2646_v52, %v270_v58  ;;  %v290_v6 = vshll.u32 %v289_v4, 16  ;;  %473 = vmatmul.f32.gmra.mxu2 %v1470_v8 }
 0x238   : > { %v304_v9 = vadd.s32 %v303_v5, %v301_v1 }
 0x239   : > { %319 = vmax.xlane.f32.xlu0 %v2091_v59  ;;  %v291_v10 = vadd.s32 %v290_v6, %v288_v43 }
 0x23a   : > { %vm306_vm7 = vcmp.eq.s32.totalorder %v1773_v20, %v304_v9 }
 0x23b   : > { %v2096_v19 = vsel %vm306_vm7, 1.0, %v2647_v45  ;;  %vm305_vm8 = vcmp.eq.s32.totalorder %v1773_v20, %v291_v10  ;;  %v2102_v61 = vpop.permute.xlu2 %438 }
 0x23c   : > { %v2105_v3 = vsel %vm305_vm8, 1.0, %v2647_v45  ;;  %vm441_vm9 = vcmp.eq.s32.totalorder %v2102_v61, 1  ;;  %v1633_v61 = vmov (%p234_p0), 0  }
 0x23d   : > { %v2112_v55 = vsel %vm441_vm9, %v2096_v19, %v1584_v55   ;;  %v420_v1 = vmul.f32 %v2105_v3, %v2091_v59 }
 0x23e   : > { %v272_v44 = vpop.f32.mrf.mxu0  ;;  %v493_v5 = vpop.permute.xlu0 %492 }
 0x23f   : > { %v2100_v38 = vadd.f32 %v2646_v52, %v272_v44  ;;  %422 = vadd.xlane.f32.xlu2 %v420_v1  ;;  %v599_v6 = vadd.f32 %v493_v5, %v1688_v2 }
 0x241   : > { %321 = vmax.xlane.f32.xlu1 %v2100_v38  ;;  %v421_v4 = vmul.f32 %v2096_v19, %v2100_v38  ;;  %v615_v8 = vrot.slane %v599_v6, 4 }
 0x243   : > { %424 = vadd.xlane.f32.xlu0 %v421_v4  ;;  %v500_v9 = vpop.permute.xlu2 %499  ;;  %v616_v42 = vmax.f32 %v599_v6, %v615_v8 }
 0x244   : > { %v600_v10 = vadd.f32 %v500_v9, %v1688_v2 }
 0x245   : > { %v617_v60 = vrot.slane %v616_v42, 2 }
 0x246   : > { %v621_v58 = vrot.slane %v600_v10, 4  ;;  %v549_v44 = vpop.permute.xlu0 %548 }
 0x247   : > { %v618_v45 = vmax.f32 %v616_v42, %v617_v60  ;;  %v607_v11 = vadd.f32 %v549_v44, %v1688_v2 }
 0x248   : > { %v622_v43 = vmax.f32 %v600_v10, %v621_v58 }
 0x249   : > { %v619_v14 = vrot.slane %v618_v45, 1  ;;  %v663_v1 = vrot.slane %v607_v11, 4 }
 0x24a   : > { %v623_v12 = vrot.slane %v622_v43, 2  ;;  %v408_v13 = vpop.f32.mrf.mxu1 }
 0x24b   : > { %v414_v4 = vmul.f32 %v2105_v3, %v408_v13  ;;  %v514_v15 = vpop.permute.xlu2 %513  ;;  %v2126_v8 = vmax.f32 %v618_v45, %v619_v14  ;;  %v664_v17 = vmax.f32 %v607_v11, %v663_v1 }
 0x24c   : > { %v624_v5 = vmax.f32 %v622_v43, %v623_v12  ;;  %v2123_v16 = vpop.permute.xlu1 %435  ;;  %v602_v9 = vadd.f32 %v514_v15, %v1688_v2 }
 0x24d   : > { %vm440_vm10 = vcmp.eq.s32.totalorder %v2123_v16, 1  ;;  %416 = vadd.xlane.f32.xlu0 %v414_v4  ;;  %vm711_vm11 = vcmp.eq.f32.partialorder %v599_v6, %v2126_v8  ;;  %v665_v12 = vrot.slane %v664_v17, 2 }
 0x24e   : > { %v625_v42 = vrot.slane %v624_v5, 1  ;;  %v2133_v51 = vsel %vm440_vm10, %v2105_v3, %v1588_v51   ;;  %v633_v13 = vrot.slane %v602_v9, 4  ;;  %v727_v58 = vsel %vm711_vm11, %v1710_v7, 8  ;;  %v570_v60 = vpop.permute.xlu0 %569 }
 0x24f   : > { %v743_v43 = vrot.slane %v727_v58, 4  ;;  %v666_v44 = vmax.f32 %v664_v17, %v665_v12  ;;  %v2138_v45 = vadd.f32 %v570_v60, %v1688_v2 }
 0x250   : > { %v626_v15 = vmax.f32 %v624_v5, %v625_v42  ;;  %v634_v14 = vmax.f32 %v602_v9, %v633_v13 }
 0x251   : > { %v411_v1 = vpop.f32.mrf.mxu3  ;;  %vm744_vm13 = vcmp.lt.s32.totalorder %v727_v58, %v743_v43  ;;  %v667_v6 = vrot.slane %v666_v44, 1  ;;  %v681_v5 = vrot.slane %v2138_v45, 4 }
 0x252   : > { %vm712_vm12 = vcmp.eq.f32.partialorder %v600_v10, %v626_v15  ;;  %v635_v4 = vrot.slane %v634_v14, 2  ;;  %v415_v18 = vmul.f32 %v2096_v19, %v411_v1  ;;  %v745_v42 = vsel %vm744_vm13, %v727_v58, %v743_v43 }
 0x253   : > { %v728_v21 = vsel %vm712_vm12, %v1710_v7, 8  ;;  %v528_v22 = vpop.permute.xlu2 %527  ;;  %v2146_v10 = vmax.f32 %v666_v44, %v667_v6  ;;  %v682_v60 = vmax.f32 %v2138_v45, %v681_v5  ;;  %v746_v1 = vrot.slane %v745_v42, 2 }
 0x254   : > { %v752_v23 = vrot.slane %v728_v21, 4  ;;  %v636_v24 = vmax.f32 %v634_v14, %v635_v4  ;;  %418 = vadd.xlane.f32.xlu1 %v415_v18  ;;  %v2144_v17 = vadd.f32 %v528_v22, %v1688_v2  ;;  %v916_v14 = vrot.slane %v2091_v59, 1 }
 0x255   : > { %vm719_vm15 = vcmp.eq.f32.partialorder %v607_v11, %v2146_v10  ;;  %v918_v18 = vrot.slane %v2091_v59, 3  ;;  %vm747_vm4 = vcmp.lt.s32.totalorder %v745_v42, %v746_v1  ;;  %vm889_vm13 = vcmask 1042434  }
 0x256   : > { %v637_v13 = vrot.slane %v636_v24, 1  ;;  %vm753_vm14 = vcmp.lt.s32.totalorder %v728_v21, %v752_v23  ;;  %v645_v25 = vrot.slane %v2144_v17, 4  ;;  %v947_v43 = vadd.f32 %v916_v14, %v626_v15 }
 0x257   : > { %v754_v4 = vsel %vm753_vm14, %v728_v21, %v752_v23  ;;  %v735_v44 = vsel %vm719_vm15, %v1710_v7, 8  ;;  %v748_v28 = vsel %vm747_vm4, %v745_v42, %v746_v1  ;;  %v946_v42 = vadd.f32 %v2126_v8, %v2091_v59 }
 0x258   : > { %v638_v12 = vmax.f32 %v636_v24, %v637_v13  ;;  %v683_v24 = vrot.slane %v682_v60, 2  ;;  %v755_v11 = vrot.slane %v754_v4, 2  ;;  %v646_v26 = vmax.f32 %v2144_v17, %v645_v25 }
 0x259   : > { %v815_v14 = vrot.slane %v735_v44, 4  ;;  %v978_v29 = vrot.slane %v947_v43, 7  ;;  %v749_v6 = vrot.slane %v748_v28, 1 }
 0x25a   : > { %vm714_vm3 = vcmp.eq.f32.partialorder %v602_v9, %v638_v12  ;;  %v684_v30 = vmax.f32 %v682_v60, %v683_v24  ;;  %v647_v25 = vrot.slane %v646_v26, 2  ;;  %vm756_vm6 = vcmp.lt.s32.totalorder %v754_v4, %v755_v11 }
 0x25b   : > { %v730_v22 = vsel %vm714_vm3, %v1710_v7, 8  ;;  %v556_v58 = vpop.permute.xlu2 %555  ;;  %vm816_vm8 = vcmp.lt.s32.totalorder %v735_v44, %v815_v14  ;;  %v757_v43 = vsel %vm756_vm6, %v754_v4, %v755_v11  ;;  %vm2188_vm11 = vcmp.lt.s32.totalorder %v748_v28, %v749_v6 }
 0x25c   : > { %v507_v5 = vpop.permute.xlu1 %506  ;;  %v770_v13 = vrot.slane %v730_v22, 4  ;;  %v2162_v9 = vadd.f32 %v556_v58, %v1688_v2  ;;  %v648_v58 = vmax.f32 %v646_v26, %v647_v25  ;;  %v685_v27 = vrot.slane %v684_v30, 1 }
 0x25d   : > { %v2159_v23 = vadd.f32 %v507_v5, %v1688_v2  ;;  %v979_v26 = vsel %vm887_vm5, %v978_v29, %v946_v42  ;;  %v2176_v25 = vadd.f32 %v918_v18, %v638_v12  ;;  %v817_v31 = vsel %vm816_vm8, %v735_v44, %v815_v14 }
 0x25e   : > { %vm771_vm7 = vcmp.lt.s32.totalorder %v730_v22, %v770_v13  ;;  %v669_v21 = vrot.slane %v2162_v9, 4  ;;  %v649_v33 = vrot.slane %v648_v58, 1  ;;  %v686_v12 = vmax.f32 %v684_v30, %v685_v27 }
 0x25f   : > { %v627_v5 = vrot.slane %v2159_v23, 4  ;;  %v772_v24 = vsel %vm771_vm7, %v730_v22, %v770_v13  ;;  %v758_v22 = vrot.slane %v757_v43, 1  ;;  %v2198_v14 = vadd.f32 %v2146_v10, %v2100_v38 }
 0x260   : > { %v670_v32 = vmax.f32 %v2162_v9, %v669_v21  ;;  %v2180_v35 = vmax.f32 %v648_v58, %v649_v33  ;;  %v773_v11 = vrot.slane %v772_v24, 2  ;;  %vm722_vm14 = vcmp.eq.f32.partialorder %v2138_v45, %v686_v12 }
 0x261   : > { %v628_v15 = vmax.f32 %v2159_v23, %v627_v5  ;;  %vm759_vm15 = vcmp.lt.s32.totalorder %v757_v43, %v758_v22  ;;  %v751_v58 = vsel %vm2188_vm11, %v748_v28, %v749_v6  ;;  %v738_v45 = vsel %vm722_vm14, %v1710_v7, 8 }
 0x262   : > { %v671_v1 = vrot.slane %v670_v32, 2  ;;  %vm716_vm12 = vcmp.eq.f32.partialorder %v2144_v17, %v2180_v35  ;;  %vm774_vm3 = vcmp.lt.s32.totalorder %v772_v24, %v773_v11  ;;  %v2650_v28 = vrot.slane %v2091_v59, 2 }
 0x263   : > { %v577_v60 = vpop.permute.xlu2 %576  ;;  %v629_v13 = vrot.slane %v628_v15, 2  ;;  %v732_v18 = vsel %vm716_vm12, %v1710_v7, 8  ;;  %vm891_vm8 = vcmask 1043459  }
 0x264   : > { %v521_v34 = vpop.permute.xlu1 %520  ;;  %v2186_v4 = vadd.f32 %v577_v60, %v1688_v2  ;;  %v672_v21 = vmax.f32 %v670_v32, %v671_v1  ;;  %v788_v30 = vrot.slane %v732_v18, 4 }
 0x265   : > { %v2183_v8 = vadd.f32 %v521_v34, %v1688_v2  ;;  %v818_v34 = vrot.slane %v817_v31, 2  ;;  %v630_v44 = vmax.f32 %v628_v15, %v629_v13  ;;  %v982_v15 = vrot.slane %v2176_v25, 5 }
 0x266   : > { %v687_v27 = vrot.slane %v2186_v4, 4  ;;  %v673_v1 = vrot.slane %v672_v21, 1  ;;  %v760_v13 = vsel %vm759_vm15, %v757_v43, %v758_v22  ;;  %vm789_vm6 = vcmp.lt.s32.totalorder %v732_v18, %v788_v30 }
 0x267   : > { %v639_v33 = vrot.slane %v2183_v8, 4  ;;  %v631_v17 = vrot.slane %v630_v44, 1  ;;  %vm819_vm4 = vcmp.lt.s32.totalorder %v817_v31, %v818_v34  ;;  %vm893_vm15 = vcmask 1044484  }
 0x268   : > { %v688_v42 = vmax.f32 %v2186_v4, %v687_v27  ;;  %v2216_v29 = vsel %vm819_vm4, %v817_v31, %v818_v34  ;;  %v842_v27 = vrot.slane %v738_v45, 4 }
 0x269   : > { %v640_v5 = vmax.f32 %v2183_v8, %v639_v33  ;;  %v632_v60 = vmax.f32 %v630_v44, %v631_v17  ;;  %v2208_v33 = vsel %vm774_vm3, %v772_v24, %v773_v11  ;;  %v2651_v44 = vrot.slane %v2100_v38, 3 }
 0x26a   : > { %v689_v37 = vrot.slane %v688_v42, 2  ;;  %v776_v22 = vrot.slane %v2208_v33, 1  ;;  %v888_v17 = vsel %vm887_vm5, %v760_v13, %v751_v58  ;;  %vm843_vm14 = vcmp.lt.s32.totalorder %v738_v45, %v842_v27 }
 0x26b   : > { %v641_v32 = vrot.slane %v640_v5, 2  ;;  %vm713_vm7 = vcmp.eq.f32.partialorder %v2159_v23, %v632_v60  ;;  %v948_v6 = vadd.f32 %v2650_v28, %v632_v60  ;;  %v2220_v43 = vadd.f32 %v2651_v44, %v686_v12 }
 0x26c   : > { %v535_v10 = vpop.permute.xlu1 %534  ;;  %v729_v24 = vsel %vm713_vm7, %v1710_v7, 8  ;;  %v690_v60 = vmax.f32 %v688_v42, %v689_v37  ;;  %vm2233_vm3 = vcmp.lt.s32.totalorder %v2208_v33, %v776_v22  ;;  %v2240_v13 = vsel %vm843_vm14, %v738_v45, %v842_v27 }
 0x26d   : > { %v642_v36 = vmax.f32 %v640_v5, %v641_v32  ;;  %v2214_v25 = vadd.f32 %v535_v10, %v1688_v2  ;;  %v761_v11 = vrot.slane %v729_v24, 4  ;;  %v980_v23 = vrot.slane %v948_v6, 6 }
 0x26e   : > { %v2224_v5 = vmax.f32 %v672_v21, %v673_v1  ;;  %v790_v32 = vsel %vm789_vm6, %v732_v18, %v788_v30  ;;  %v691_v42 = vrot.slane %v690_v60, 1  ;;  %v2654_v6 = vrot.slane %v2091_v59, 4 }
 0x26f   : > { %v643_v10 = vrot.slane %v642_v36, 1  ;;  %vm762_vm11 = vcmp.lt.s32.totalorder %v729_v24, %v761_v11  ;;  %v981_v31 = vsel %vm889_vm13, %v980_v23, %v979_v26  ;;  %v651_v12 = vrot.slane %v2214_v25, 4 }
 0x270   : > { %vm720_vm12 = vcmp.eq.f32.partialorder %v2162_v9, %v2224_v5  ;;  %v763_v28 = vsel %vm762_vm11, %v729_v24, %v761_v11  ;;  %v791_v30 = vrot.slane %v790_v32, 2  ;;  %v2655_v24 = vrot.slane %v2091_v59, 5 }
 0x271   : > { %v764_v18 = vrot.slane %v763_v28, 2  ;;  %v644_v26 = vmax.f32 %v642_v36, %v643_v10  ;;  %v736_v9 = vsel %vm720_vm12, %v1710_v7, 8  ;;  %v652_v1 = vmax.f32 %v2214_v25, %v651_v12 }
 0x272   : > { %v2248_v11 = vadd.f32 %v2655_v24, %v2180_v35  ;;  %v2251_v10 = vmax.f32 %v690_v60, %v691_v42  ;;  %v824_v12 = vrot.slane %v736_v9, 4  ;;  %vm2253_vm7 = vcmp.lt.s32.totalorder %v790_v32, %v791_v30 }
 0x273   : > { %vm765_vm4 = vcmp.lt.s32.totalorder %v763_v28, %v764_v18  ;;  %vm715_vm6 = vcmp.eq.f32.partialorder %v2183_v8, %v644_v26  ;;  %v950_v44 = vadd.f32 %v2654_v6, %v644_v26  ;;  %v983_v8 = vsel %vm891_vm8, %v982_v15, %v981_v31 }
 0x274   : > { %v563_v21 = vpop.permute.xlu1 %562  ;;  %v766_v36 = vsel %vm765_vm4, %v763_v28, %v764_v18  ;;  %v731_v23 = vsel %vm715_vm6, %v1710_v7, 8  ;;  %vm723_vm11 = vcmp.eq.f32.partialorder %v2186_v4, %v2251_v10  ;;  %v653_v35 = vrot.slane %v652_v1, 2 }
 0x275   : > { %v767_v37 = vrot.slane %v766_v36, 1  ;;  %v779_v45 = vrot.slane %v731_v23, 4  ;;  %v984_v27 = vrot.slane %v950_v44, 4  ;;  %v2262_v60 = vadd.f32 %v563_v21, %v1688_v2 }
 0x276   : > { %v845_v18 = vrot.slane %v2240_v13, 2  ;;  %v739_v6 = vsel %vm723_vm11, %v1710_v7, 8  ;;  %vm895_vm4 = vcmask 1045509   ;;  %vm825_vm6 = vcmp.lt.s32.totalorder %v736_v9, %v824_v12 }
 0x277   : > { %vm768_vm12 = vcmp.lt.s32.totalorder %v766_v36, %v767_v37  ;;  %vm780_vm14 = vcmp.lt.s32.totalorder %v731_v23, %v779_v45  ;;  %v985_v28 = vsel %vm893_vm15, %v984_v27, %v983_v8  ;;  %v851_v31 = vrot.slane %v739_v6, 4 }
 0x278   : > { %v769_v26 = vsel %vm768_vm12, %v766_v36, %v767_v37  ;;  %v781_v42 = vsel %vm780_vm14, %v731_v23, %v779_v45  ;;  %v778_v24 = vsel %vm2233_vm3, %v2208_v33, %v776_v22  ;;  %v793_v21 = vsel %vm2253_vm7, %v790_v32, %v791_v30 }
 0x279   : > { %v890_v15 = vsel %vm889_vm13, %v769_v26, %v888_v17  ;;  %v782_v4 = vrot.slane %v781_v42, 2  ;;  %v986_v27 = vrot.slane %v2248_v11, 3  ;;  %v654_v37 = vmax.f32 %v652_v1, %v653_v35 }
 0x27a   : > { %vm852_vm14 = vcmp.lt.s32.totalorder %v739_v6, %v851_v31  ;;  %v675_v36 = vrot.slane %v2262_v60, 4  ;;  %vm2278_vm11 = vcmp.lt.s32.totalorder %v2240_v13, %v845_v18  ;;  %v826_v58 = vsel %vm825_vm6, %v736_v9, %v824_v12 }
 0x27b   : > { %vm783_vm12 = vcmp.lt.s32.totalorder %v781_v42, %v782_v4  ;;  %v655_v22 = vrot.slane %v654_v37, 1  ;;  %vm897_vm3 = vcmask 1046534   ;;  %v794_v1 = vrot.slane %v793_v21, 1 }
 0x27c   : > { %v584_v44 = vpop.permute.xlu1 %583  ;;  %v784_v33 = vsel %vm783_vm12, %v781_v42, %v782_v4  ;;  %v676_v32 = vmax.f32 %v2262_v60, %v675_v36  ;;  %v2660_v11 = vrot.slane %v2100_v38, 1  ;;  %v853_v8 = vsel %vm852_vm14, %v739_v6, %v851_v31 }
 0x27d   : > { %v2275_v23 = vadd.f32 %v584_v44, %v1688_v2  ;;  %v785_v34 = vrot.slane %v784_v33, 1  ;;  %v656_v35 = vmax.f32 %v654_v37, %v655_v22  ;;  %v827_v26 = vrot.slane %v826_v58, 2 }
 0x27e   : > { %v955_v45 = vadd.f32 %v2660_v11, %v2224_v5  ;;  %v677_v44 = vrot.slane %v676_v32, 2  ;;  %v892_v42 = vsel %vm891_vm8, %v778_v24, %v890_v15  ;;  %v2661_v4 = vrot.slane %v2091_v59, 6 }
 0x27f   : > { %v693_v30 = vrot.slane %v2275_v23, 4  ;;  %vm786_vm7 = vcmp.lt.s32.totalorder %v784_v33, %v785_v34  ;;  %vm717_vm6 = vcmp.eq.f32.partialorder %v2214_v25, %v656_v35  ;;  %v854_v52 = vrot.slane %v853_v8, 2 }
 0x280   : > { %v787_v12 = vsel %vm786_vm7, %v784_v33, %v785_v34  ;;  %v952_v36 = vadd.f32 %v2661_v4, %v656_v35  ;;  %v733_v5 = vsel %vm717_vm6, %v1710_v7, 8  ;;  %v678_v6 = vmax.f32 %v676_v32, %v677_v44 }
 0x281   : > { %v694_v9 = vmax.f32 %v2275_v23, %v693_v30  ;;  %v894_v40 = vsel %vm893_vm15, %v787_v12, %v892_v42  ;;  %v2297_v31 = vsel %vm2278_vm11, %v2240_v13, %v845_v18  ;;  %v797_v37 = vrot.slane %v733_v5, 4 }
 0x282   : > { %v988_v33 = vrot.slane %v952_v36, 2  ;;  %vm828_vm12 = vcmp.lt.s32.totalorder %v826_v58, %v827_v26  ;;  %v992_v15 = vrot.slane %v955_v45, 7  ;;  %v987_v25 = vsel %vm895_vm4, %v986_v27, %v985_v28 }
 0x283   : > { %v695_v22 = vrot.slane %v694_v9, 2  ;;  %v679_v24 = vrot.slane %v678_v6, 1  ;;  %vm795_vm14 = vcmp.lt.s32.totalorder %v793_v21, %v794_v1  ;;  %vm798_vm7 = vcmp.lt.s32.totalorder %v733_v5, %v797_v37 }
 0x284   : > { %v2301_v34 = vsel %vm897_vm3, %v988_v33, %v987_v25  ;;  %v848_v32 = vrot.slane %v2297_v31, 1  ;;  %vm855_vm6 = vcmp.lt.s32.totalorder %v853_v8, %v854_v52  ;;  %v799_v17 = vsel %vm798_vm7, %v733_v5, %v797_v37 }
 0x285   : > { %v696_v30 = vmax.f32 %v694_v9, %v695_v22  ;;  %v680_v13 = vmax.f32 %v678_v6, %v679_v24  ;;  %v2662_v18 = vrot.slane %v2216_v29, 1  ;;  %v829_v28 = vsel %vm828_vm12, %v826_v58, %v827_v26 }
 0x286   : > { %v2665_v27 = vrot.slane %v2100_v38, 4  ;;  %v800_v35 = vrot.slane %v799_v17, 2  ;;  %v796_v9 = vsel %vm795_vm14, %v793_v21, %v794_v1  ;;  %v993_v12 = vsel %vm887_vm5, %v992_v15, %v2198_v14 }
 0x287   : > { %vm2307_vm11 = vcmp.lt.s32.totalorder %v2216_v29, %v2662_v18  ;;  %v697_v44 = vrot.slane %v696_v30, 1  ;;  %vm721_vm7 = vcmp.eq.f32.partialorder %v2262_v60, %v680_v13  ;;  %v2666_v42 = vrot.slane %v2100_v38, 2 }
 0x288   : > { %v958_v45 = vadd.f32 %v2665_v27, %v2251_v10  ;;  %v856_v36 = vsel %vm855_vm6, %v853_v8, %v854_v52  ;;  %vm801_vm2 = vcmp.lt.s32.totalorder %v799_v17, %v800_v35  ;;  %v737_v5 = vsel %vm721_vm7, %v1710_v7, 8 }
 0x289   : > { %v956_v4 = vadd.f32 %v2666_v42, %v680_v13  ;;  %v698_v58 = vmax.f32 %v696_v30, %v697_v44  ;;  %v830_v26 = vrot.slane %v829_v28, 1  ;;  %v802_v6 = vsel %vm801_vm2, %v799_v17, %v800_v35 }
 0x28a   : > { %v833_v37 = vrot.slane %v737_v5, 4  ;;  %v998_v33 = vrot.slane %v958_v45, 4  ;;  %v803_v22 = vrot.slane %v802_v6, 1  ;;  %v2667_v14 = vrot.slane %v2100_v38, 5 }
 0x28b   : > { %v994_v10 = vrot.slane %v956_v4, 6  ;;  %vm724_vm12 = vcmp.eq.f32.partialorder %v2275_v23, %v698_v58  ;;  %v857_v60 = vrot.slane %v856_v36, 1  ;;  %v2668_v15 = vrot.slane %v2220_v43, 5 }
 0x28c   : > { %v959_v21 = vadd.f32 %v2667_v14, %v698_v58  ;;  %vm834_vm14 = vcmp.lt.s32.totalorder %v737_v5, %v833_v37  ;;  %v740_v52 = vsel %vm724_vm12, %v1710_v7, 8  ;;  %vm804_vm6 = vcmp.lt.s32.totalorder %v802_v6, %v803_v22 }
 0x28d   : > { %v995_v1 = vsel %vm889_vm13, %v994_v10, %v993_v12  ;;  %v835_v8 = vsel %vm834_vm14, %v737_v5, %v833_v37  ;;  %v860_v24 = vrot.slane %v740_v52, 4  ;;  %v805_v30 = vsel %vm804_vm6, %v802_v6, %v803_v22 }
 0x28e   : > { %v997_v25 = vsel %vm891_vm8, %v2668_v15, %v995_v1  ;;  %v896_v17 = vsel %vm895_vm4, %v796_v9, %v894_v40  ;;  %v836_v23 = vrot.slane %v835_v8, 2  ;;  %v1000_v13 = vrot.slane %v959_v21, 3 }
 0x28f   : > { %vm831_vm2 = vcmp.lt.s32.totalorder %v829_v28, %v830_v26  ;;  %v2330_v18 = vsel %vm897_vm3, %v805_v30, %v896_v17  ;;  %vm861_vm7 = vcmp.lt.s32.totalorder %v740_v52, %v860_v24  ;;  %v999_v27 = vsel %vm893_vm15, %v998_v33, %v997_v25 }
 0x290   : > { %vm837_vm12 = vcmp.lt.s32.totalorder %v835_v8, %v836_v23  ;;  %v862_v45 = vsel %vm861_vm7, %v740_v52, %v860_v24  ;;  %v2334_v35 = vsel %vm895_vm4, %v1000_v13, %v999_v27  ;;  %v2669_v12 = vrot.slane %v2216_v29, 1 }
 0x291   : > { %v838_v43 = vsel %vm837_vm12, %v835_v8, %v836_v23  ;;  %v863_v44 = vrot.slane %v862_v45, 2  ;;  %v832_v9 = vsel %vm831_vm2, %v829_v28, %v830_v26  ;;  %vm858_vm14 = vcmp.lt.s32.totalorder %v856_v36, %v857_v60 }
 0x292   : > { %v823_v40 = vsel %vm2307_vm11, %v2216_v29, %v2669_v12  ;;  %v839_v42 = vrot.slane %v838_v43, 1  ;;  %vm849_vm6 = vcmp.lt.s32.totalorder %v2297_v31, %v848_v32  ;;  %v859_v58 = vsel %vm858_vm14, %v856_v36, %v857_v60 }
 0x293   : > { %vm864_vm1 = vcmp.lt.s32.totalorder %v862_v45, %v863_v44  ;;  %v901_v5 = vsel %vm887_vm5, %v832_v9, %v823_v40  ;;  %v850_v10 = vsel %vm849_vm6, %v2297_v31, %v848_v32  ;;  %vm899_vm12 = vcmask 1047559  }
 0x294   : > { %vm840_vm0 = vcmp.lt.s32.totalorder %v838_v43, %v839_v42  ;;  %v865_v4 = vsel %vm864_vm1, %v862_v45, %v863_v44 }
 0x295   : > { %v841_v6 = vsel %vm840_vm0, %v838_v43, %v839_v42  ;;  %v866_v37 = vrot.slane %v865_v4, 1 }
 0x296   : > { %v902_v33 = vsel %vm889_vm13, %v841_v6, %v901_v5  ;;  %v592_v5 = vperm.slane %v1576_v48, 7 }
 0x297   : > { %v903_v11 = vsel %vm891_vm8, %v850_v10, %v902_v33  ;;  %vm867_vm11 = vcmp.lt.s32.totalorder %v865_v4, %v866_v37 }
 0x298   : > { %v868_v29 = vsel %vm867_vm11, %v865_v4, %v866_v37  ;;  %v904_v28 = vsel %vm893_vm15, %v859_v58, %v903_v11 }
 0x299   : > { %v2348_v26 = vsel %vm895_vm4, %v868_v29, %v904_v28 }
 0x2ac   : > { %v320_v22 = vpop.xlane.xlu0 %319 }
 0x2ad   : > { %v323_v14 = vsub.f32 %v2091_v59, %v320_v22 }
 0x2af   : > { %v325_v21 = vmul.f32 1.442695, %v323_v14 }
 0x2b0   : > { %v471_v31 = vpop.f32.mrf.mxu2 }
 0x2b1   : > { %1471 = vpow2.f32 %v325_v21 }
 0x2b2   : > { %1473 = vlog2.f32 %v471_v31  ;;  %v423_v27 = vpop.xlane.xlu2 %422 }
 0x2b4   : > { %v322_v36 = vpop.xlane.xlu1 %321 }
 0x2b5   : > { %v324_v60 = vsub.f32 %v2100_v38, %v322_v36 }
 0x2b6   : > { %v425_v8 = vpop.xlane.xlu0 %424 }
 0x2b7   : > { %v1472_v32 = vpop.eup %1471  ;;  %v327_v1 = vmul.f32 1.442695, %v324_v60 }
 0x2b8   : > { %335 = vadd.xlane.f32.xlu1 %v1472_v32  ;;  %v329_v52 = vmul.f32 %v1472_v32, %v2105_v3  ;;  %v1474_v15 = vpop.eup %1473 }
 0x2b9   : > { %1475 = vpow2.f32 %v327_v1  ;;  %v478_v25 = vmul.f32 0.6931472, %v1474_v15 }
 0x2ba   : > { %331 = vadd.xlane.f32.xlu2 %v329_v52  ;;  %v474_v17 = vpop.f32.mrf.mxu2 }
 0x2bb   : > { %v481_v30 = vadd.f32 %v478_v25, %v2082_v0  ;;  %1477 = vlog2.f32 %v474_v17 }
 0x2bd   : > { %v483_v13 = vadd.f32 %v481_v30, %v2091_v59 }
 0x2bf   : > { %v1476_v24 = vpop.eup %1475  ;;  %v2359_v54 = vsel %vm440_vm10, %v483_v13, %v1604_v54  }
 0x2c0   : > { %v330_v23 = vmul.f32 %v1476_v24, %v2096_v19  ;;  %v2670_v3 = vmov %v2359_v54  ;;  %v417_v45 = vpop.xlane.xlu0 %416 }
 0x2c1   : > { %v426_v43 = vadd.f32 %v423_v27, %v417_v45  ;;  %v1478_v44 = vpop.eup %1477 }
 0x2c2   : > { %333 = vadd.xlane.f32.xlu0 %v330_v23  ;;  %337 = vadd.xlane.f32.xlu2 %v1476_v24  ;;  %v480_v0 = vmul.f32 0.6931472, %v1478_v44 }
 0x2c3   : > { %v428_v12 = vmul.f32 %v2060_v57, %v426_v43 }
 0x2c4   : > { %v482_v40 = vadd.f32 %v480_v0, %v2086_v62  ;;  %v536_v62 = vperm.slane %v1580_v50, 7 }
 0x2c5   : > { %v2363_v53 = vadd.f32 %v1596_v53, %v428_v12  }
 0x2c6   : > { %v484_v42 = vadd.f32 %v482_v40, %v2100_v38 }
 0x2c7   : > { %v2671_v19 = vmov %v2363_v53  ;;  %v419_v9 = vpop.xlane.xlu1 %418  ;;  %v585_v53 = vperm.slane %v1576_v48, 6 }
 0x2c8   : > { %v427_v4 = vadd.f32 %v425_v8, %v419_v9  ;;  %v2371_v56 = vsel %vm441_vm9, %v484_v42, %v1600_v56  }
 0x2c9   : > { %v2672_v58 = vmov %v2371_v56 }
 0x2ca   : > { %v429_v54 = vmul.f32 %v2056_v49, %v427_v4 }
 0x2cc   : > { %v2375_v41 = vadd.f32 %v1592_v41, %v429_v54  }
 0x2ce   : > { %v2673_v6 = vmov %v2375_v41 }
 0x2d1   : > { %597 = vperm.xlu1 %1466, %v592_v5  }
 0x2d6   : > { %590 = vperm.xlu0 %1464, %v585_v53  }
 0x2d9   :  { %1487 = vset.pattern.permute.xlu1 (%p234_p0), %v1633_v61 }
 0x2da   : > { %541 = vperm.xlu2 %1465, %v536_v62  }
 0x2de   :  { %1489 = vset.pattern.permute.xlu0 (%p234_p0), %v1633_v61 }
 0x2e2   :  { %1488 = vset.pattern.permute.xlu2 (%p234_p0), %v1633_v61 }
 0x300   :  { %1010 = vmax.xlane.f32.xlu0 (%p234_p0), %v2670_v3 }
 0x308   :  { %1012 = vmax.xlane.f32.xlu0 (%p234_p0), %v2672_v58 }
 0x32b   : > { %v336_v37 = vpop.xlane.xlu1 %335 }
 0x32c   : > { %1479 = vrcp.f32 %v336_v37  ;;  %v350_v56 = vand.u32 2147483648, %v336_v37  ;;  %v348_v14 = vand.u32 2147483647, %v336_v37  ;;  %vm344_vm1 = vweird.f32 %v336_v37 }
 0x32d   : > { %v332_v10 = vpop.xlane.xlu2 %331 }
 0x32e   : > { %v351_v21 = vor.u32 1.1754944e-38, %v350_v56  ;;  %vm349_vm13 = vcmp.eq.f32.partialorder %v348_v14, 8.507059e+37 }
 0x332   : > { %v1480_v33 = vpop.eup %1479 }
 0x333   : > { %v340_v11 = vmul.f32 %v1480_v33, %v336_v37  ;;  %vm345_vm0 = vweird.f32 %v1480_v33 }
 0x334   : > { %vm346_vm5 = vmor %vm344_vm1, %vm345_vm0 }
 0x335   : > { %v341_v29 = vsub.f32 1.0, %v340_v11  ;;  %v338_v28 = vpop.xlane.xlu2 %337  ;;  %v334_v23 = vpop.xlane.xlu0 %333 }
 0x336   : > { %1481 = vrcp.f32 %v338_v28  ;;  %v363_v30 = vand.u32 2147483647, %v338_v28  ;;  %v365_v17 = vand.u32 2147483648, %v338_v28  ;;  %vm359_vm15 = vweird.f32 %v338_v28 }
 0x337   : > { %v342_v22 = vmul.f32 %v1480_v33, %v341_v29 }
 0x338   : > { %v366_v40 = vor.u32 1.1754944e-38, %v365_v17  ;;  %vm364_vm2 = vcmp.eq.f32.partialorder %v363_v30, 8.507059e+37 }
 0x339   : > { %v343_v41 = vadd.f32 %v1480_v33, %v342_v22 }
 0x33b   : > { %v347_v36 = vsel %vm346_vm5, %v1480_v33, %v343_v41 }
 0x33c   : > { %v1482_v60 = vpop.eup %1481  ;;  %v352_v31 = vsel %vm349_vm13, %v351_v21, %v347_v36  ;;  %v922_v36 = vrot.slane %v2091_v59, 7 }
 0x33d   : > { %v353_v32 = vmul.f32 %v352_v31, %v332_v10  ;;  %v355_v1 = vmul.f32 %v1482_v60, %v338_v28  ;;  %v542_v52 = vpop.permute.xlu2 %541  ;;  %vm360_vm8 = vweird.f32 %v1482_v60 }
 0x33e   : > { %v606_v8 = vadd.f32 %v542_v52, %v1688_v2  ;;  %vm361_vm4 = vmor %vm359_vm15, %vm360_vm8 }
 0x33f   : > { %v369_v15 = vmax.f32 %v353_v32, 0.01  ;;  %v379_v25 = vadd.f32 1e-08, %v353_v32  ;;  %v356_v24 = vsub.f32 1.0, %v355_v1 }
 0x340   : > { %v657_v13 = vrot.slane %v606_v8, 4 }
 0x341   : > { %v371_v27 = vmin.f32 %v369_v15, 0.99  ;;  %1483 = vlog2.f32 %v379_v25  ;;  %v357_v45 = vmul.f32 %v1482_v60, %v356_v24 }
 0x342   : > { %v658_v43 = vmax.f32 %v606_v8, %v657_v13 }
 0x343   : > { %v373_v44 = vsub.f32 1.0, %v371_v27  ;;  %v358_v12 = vadd.f32 %v1482_v60, %v357_v45  ;;  %v598_v0 = vpop.permute.xlu1 %597 }
 0x344   : > { %v659_v9 = vrot.slane %v658_v43, 2  ;;  %v614_v42 = vadd.f32 %v598_v0, %v1688_v2 }
 0x345   : > { %v1314_v4 = vmul.f32 %v373_v44, %v373_v44  ;;  %v362_v5 = vsel %vm361_vm4, %v1482_v60, %v358_v12 }
 0x346   : > { %v367_v54 = vsel %vm364_vm2, %v366_v40, %v362_v5  ;;  %v660_v53 = vmax.f32 %v658_v43, %v659_v9  ;;  %v705_v62 = vrot.slane %v614_v42, 4 }
 0x347   : > { %v1484_v37 = vpop.eup %1483  ;;  %v377_v10 = vsub.f32 0.0, %v1314_v4  ;;  %v368_v33 = vmul.f32 %v367_v54, %v334_v23 }
 0x348   : > { %v382_v11 = vmul.f32 0.6931472, %v1484_v37  ;;  %v661_v29 = vrot.slane %v660_v53, 1  ;;  %v706_v56 = vmax.f32 %v614_v42, %v705_v62  ;;  %v591_v22 = vpop.permute.xlu0 %590 }
 0x349   : > { %v370_v28 = vmax.f32 %v368_v33, 0.01  ;;  %v380_v14 = vadd.f32 1e-08, %v368_v33  ;;  %v613_v41 = vadd.f32 %v591_v22, %v1688_v2 }
 0x34a   : > { %v385_v21 = vmul.f32 %v382_v11, %v377_v10  ;;  %v662_v31 = vmax.f32 %v660_v53, %v661_v29  ;;  %v707_v60 = vrot.slane %v706_v56, 2  ;;  %v928_v10 = vrot.slane %v2100_v38, 6 }
 0x34b   : > { %v372_v32 = vmin.f32 %v370_v28, 0.99  ;;  %1485 = vlog2.f32 %v380_v14  ;;  %v699_v1 = vrot.slane %v613_v41, 4 }
 0x34c   : > { %v387_v52 = vmul.f32 %v2060_v57, %v385_v21  ;;  %vm718_vm7 = vcmp.eq.f32.partialorder %v606_v8, %v662_v31  ;;  %v953_v15 = vadd.f32 %v922_v36, %v662_v31  ;;  %v708_v25 = vmax.f32 %v706_v56, %v707_v60 }
 0x34d   : > { %v374_v24 = vsub.f32 1.0, %v372_v32  ;;  %v734_v30 = vsel %vm718_vm7, %v1710_v7, 8  ;;  %v700_v17 = vmax.f32 %v613_v41, %v699_v1 }
 0x34e   : > { %v2386_v39 = vadd.f32 %v1572_v39, %v387_v52   ;;  %v806_v13 = vrot.slane %v734_v30, 4  ;;  %v990_v59 = vrot.slane %v953_v15, 1  ;;  %v709_v27 = vrot.slane %v708_v25, 1 }
 0x34f   : > { %v1315_v45 = vmul.f32 %v374_v24, %v374_v24  ;;  %v701_v43 = vrot.slane %v700_v17, 2 }
 0x350   : > { %v2674_v23 = vmov %v2386_v39  ;;  %vm807_vm14 = vcmp.lt.s32.totalorder %v734_v30, %v806_v13  ;;  %v991_v57 = vsel %vm899_vm12, %v990_v59, %v2301_v34  ;;  %v710_v8 = vmax.f32 %v708_v25, %v709_v27 }
 0x351   : > { %v1486_v44 = vpop.eup %1485  ;;  %v378_v12 = vsub.f32 0.0, %v1315_v45  ;;  %v808_v0 = vsel %vm807_vm14, %v734_v30, %v806_v13  ;;  %v2393_v50 = vsel %vm440_vm10, %v991_v57, %v1580_v50   ;;  %v702_v39 = vmax.f32 %v700_v17, %v701_v43 }
 0x352   : > { %v2675_v40 = vmov %v2393_v50  ;;  %v384_v9 = vmul.f32 0.6931472, %v1486_v44  ;;  %v809_v4 = vrot.slane %v808_v0, 2  ;;  %vm726_vm6 = vcmp.eq.f32.partialorder %v614_v42, %v710_v8 }
 0x353   : > { %v742_v5 = vsel %vm726_vm6, %v1710_v7, 8  ;;  %v703_v54 = vrot.slane %v702_v39, 1  ;;  %v929_v34 = vrot.slane %v2100_v38, 7  ;;  %1066 = vmax.xlane.f32.xlu1 (%p234_p0), %v2675_v40 }
 0x354   : > { %v386_v53 = vmul.f32 %v384_v9, %v378_v12  ;;  %vm810_vm11 = vcmp.lt.s32.totalorder %v808_v0, %v809_v4  ;;  %v878_v62 = vrot.slane %v742_v5, 4 }
 0x355   : > { %v811_v37 = vsel %vm810_vm11, %v808_v0, %v809_v4  ;;  %v704_v33 = vmax.f32 %v702_v39, %v703_v54  ;;  %v961_v29 = vadd.f32 %v929_v34, %v710_v8  ;;  %v2678_v39 = vmov %v2674_v23 }
 0x356   : > { %v388_v11 = vmul.f32 %v2056_v49, %v386_v53  ;;  %v812_v50 = vrot.slane %v811_v37, 1  ;;  %vm879_vm0 = vcmp.lt.s32.totalorder %v742_v5, %v878_v62  ;;  %v2682_v53 = vmov %v2671_v19 }
 0x357   : > { %v880_v56 = vsel %vm879_vm0, %v742_v5, %v878_v62  ;;  %vm725_vm1 = vcmp.eq.f32.partialorder %v613_v41, %v704_v33  ;;  %v960_v42 = vadd.f32 %v928_v10, %v704_v33  ;;  %v1004_v49 = vrot.slane %v961_v29, 1 }
 0x358   : > { %v2401_v47 = vadd.f32 %v1568_v47, %v388_v11   ;;  %vm813_vm5 = vcmp.lt.s32.totalorder %v811_v37, %v812_v50  ;;  %v881_v28 = vrot.slane %v880_v56, 2  ;;  %v741_v14 = vsel %vm725_vm1, %v1710_v7, 8 }
 0x359   : > { %v814_v21 = vsel %vm813_vm5, %v811_v37, %v812_v50  ;;  %v869_v36 = vrot.slane %v741_v14, 4  ;;  %v1002_v38 = vrot.slane %v960_v42, 2  ;;  %v2680_v50 = vmov %v2675_v40 }
 0x35a   : > { %v2676_v22 = vmov %v2401_v47  ;;  %v900_v31 = vsel %vm899_vm12, %v814_v21, %v2330_v18  ;;  %vm882_vm13 = vcmp.lt.s32.totalorder %v880_v56, %v881_v28  ;;  %v2684_v54 = vmov %v2670_v3 }
 0x35b   : > { %v908_v41 = vsel %vm440_vm10, %v900_v31, %v1773_v20  ;;  %v883_v60 = vsel %vm882_vm13, %v880_v56, %v881_v28  ;;  %vm870_vm8 = vcmp.lt.s32.totalorder %v741_v14, %v869_v36  ;;  %v1003_v47 = vsel %vm897_vm3, %v1002_v38, %v2334_v35 }
 0x35c   : > { %912 = vst [vmem:[%s911_s18] sm:$0xff] %v908_v41  ;;  %v871_v32 = vsel %vm870_vm8, %v741_v14, %v869_v36  ;;  %v1005_v1 = vsel %vm899_vm12, %v1004_v49, %v1003_v47  ;;  %v884_v15 = vrot.slane %v883_v60, 1  ;;  %v2677_v47 = vmov %v2676_v22 }
 0x35d   : > { %v872_v52 = vrot.slane %v871_v32, 2  ;;  %v1009_v18 = vsel %vm441_vm9, %v1005_v1, %v1576_v48   ;;  %v2681_v41 = vmov %v2673_v6  ;;  %v2683_v56 = vmov %v2672_v58 }
 0x35e   : > { %vm885_vm10 = vcmp.lt.s32.totalorder %v883_v60, %v884_v15  ;;  %v2679_v48 = vmov %v1009_v18  ;;  %1068 = vmax.xlane.f32.xlu1 (%p234_p0), %v1009_v18  ;;  %v1033_v7 = vcvt.s32.f32 (%p234_p0), %v1920_v46  ;;  %v1032_v33 = vcvt.s32.f32 (%p234_p0), %v1913_v63 }
 0x35f   : > { %vm873_vm15 = vcmp.lt.s32.totalorder %v871_v32, %v872_v52  ;;  %v886_v30 = vsel %vm885_vm10, %v883_v60, %v884_v15  ;;  %vm1136_vm8 = vcmp.eq.s32.totalorder (%p234_p0), %v1773_v20, 7  ;;  %vm1114_vm10 = vcmp.eq.s32.totalorder (%p234_p0), %v1773_v20, 1 }
 0x360   : > { %v874_v25 = vsel %vm873_vm15, %v871_v32, %v872_v52  ;;  %v1035_v45 = vmax.f32 (%p234_p0), %v1033_v7, 1.0  ;;  %v1034_v11 = vmax.f32 (%p234_p0), %v1032_v33, 1.0 }
 0x361   : > { %v875_v16 = vrot.slane %v874_v25, 1 }
 0x362   :  { %vm1056_vm2 = vweird.f32 (%p234_p0), %v1035_v45  ;;  %v1062_v54 = vand.u32 (%p234_p0), 2147483648, %v1035_v45  ;;  %v1060_v53 = vand.u32 (%p234_p0), 2147483647, %v1035_v45  ;;  %v1047_v28 = vand.u32 (%p234_p0), 2147483648, %v1034_v11 }
 0x363   : > { %vm876_vm4 = vcmp.lt.s32.totalorder %v874_v25, %v875_v16  ;;  %vm1041_vm6 = vweird.f32 (%p234_p0), %v1034_v11  ;;  %v1045_v21 = vand.u32 (%p234_p0), 2147483647, %v1034_v11 }
 0x364   : > { %v877_v24 = vsel %vm876_vm4, %v874_v25, %v875_v16  ;;  %236 = sbr.rel (!%p234_p0) target bundleno = 428 (0x1ac), region = 73  ;;  %v1063_v34 = vor.u32 (%p234_p0), 1.1754944e-38, %v1062_v54  ;;  %vm1061_vm14 = vcmp.eq.f32.partialorder (%p234_p0), %v1060_v53, 8.507059e+37  ;;  %v1048_v36 = vor.u32 (%p234_p0), 1.1754944e-38, %v1047_v28 }
 0x365   : > { %v906_v35 = vsel %vm897_vm3, %v877_v24, %v2348_v26  ;;  %vm1046_vm1 = vcmp.eq.f32.partialorder (%p234_p0), %v1045_v21, 8.507059e+37  ;;  %vm2685_vm4 = vcmp.eq.s32.totalorder (%p234_p0), %v1773_v20, 0 }
 0x366   : > { %v907_v17 = vsel %vm899_vm12, %v886_v30, %v906_v35 }
 0x367   : > { %v909_v13 = vsel %vm441_vm9, %v907_v17, %v1773_v20 }
 0x368   : > { %913 = vst [vmem:[%s911_s18 + $0x8] sm:$0xff] %v909_v13 }
 0x373   :  { %v2461_v59 = vpop.xlane.xlu0 %1010 }
 0x374   :  { %v1014_v2 = vsub.f32 %v2670_v3, %v2461_v59 }
 0x376   :  { %v1016_v48 = vmul.f32 1.442695, %v1014_v2 }
 0x378   :  { %1490 = vpow2.f32 %v1016_v48 }
 0x379   :  { %1492 = vrcp.f32 %v1035_v45 }
 0x37b   :  { %v2471_v57 = vpop.xlane.xlu0 %1012 }
 0x37c   :  { %v1015_v8 = vsub.f32 %v2672_v58, %v2471_v57 }
 0x37e   :  { %v1491_v3 = vpop.eup %1490  ;;  %v1018_v44 = vmul.f32 1.442695, %v1015_v8 }
 0x37f   :  { %1020 = vadd.xlane.f32.xlu2 %v1491_v3 }
 0x380   :  { %1494 = vpow2.f32 %v1018_v44 }
 0x381   :  { %1496 = vrcp.f32 %v1034_v11 }
 0x3c6   :  { %v2459_v26 = vpop.xlane.xlu1 %1066 }
 0x3c7   :  { %vm1070_vm9 = vcmp.eq.f32.partialorder %v2675_v40, %v2459_v26  ;;  %v1493_v40 = vpop.eup %1492 }
 0x3c8   :  { %v1072_v51 = vsel %vm1070_vm9, %v1773_v20, 128  ;;  %v1052_v39 = vmul.f32 %v1493_v40, %v1035_v45  ;;  %v1495_v9 = vpop.eup %1494  ;;  %vm1057_vm7 = vweird.f32 %v1493_v40  ;;  %vm1129_vm9 = vcmp.eq.s32.totalorder %v1773_v20, 2 }
 0x3c9   :  { %v1075_v55 = vshra.s32 %v1072_v51, 16  ;;  %1022 = vadd.xlane.f32.xlu2 %v1495_v9  ;;  %vm1058_vm12 = vmor %vm1056_vm2, %vm1057_vm7  ;;  %v1497_v50 = vpop.eup %1496  ;;  %v1074_v31 = vand.u32 65535, %v1072_v51 }
 0x3ca   :  { %v1053_v4 = vsub.f32 1.0, %v1052_v39  ;;  %v1037_v29 = vmul.f32 %v1497_v50, %v1034_v11  ;;  %vm1042_vm11 = vweird.f32 %v1497_v50  ;;  %vm2686_vm2 = vmmov %vm2685_vm4 }
 0x3cb   :  { %v1077_v27 = vcvt.s32.f32 %v1075_v55  ;;  %vm1043_vm0 = vmor %vm1041_vm6, %vm1042_vm11  ;;  %v1076_v41 = vcvt.s32.f32 %v1074_v31 }
 0x3cc   :  { %v1054_v5 = vmul.f32 %v1493_v40, %v1053_v4  ;;  %v1038_v56 = vsub.f32 1.0, %v1037_v29 }
 0x3cd   :  { %1078 = vmin.xlane.f32.xlu0 %v1077_v27 }
 0x3ce   :  { %v1055_v58 = vadd.f32 %v1493_v40, %v1054_v5  ;;  %v1039_v42 = vmul.f32 %v1497_v50, %v1038_v56 }
 0x3d0   :  { %v1059_v62 = vsel %vm1058_vm12, %v1493_v40, %v1055_v58  ;;  %v1040_v14 = vadd.f32 %v1497_v50, %v1039_v42 }
 0x3d1   :  { %v2469_v43 = vpop.xlane.xlu1 %1068  ;;  %v1064_v37 = vsel %vm1061_vm14, %v1063_v34, %v1059_v62  ;;  %v1130_v34 = vsel %vm1129_vm9, %v2459_v26, 0.0 }
 0x3d2   :  { %vm1071_vm3 = vcmp.eq.f32.partialorder %v1009_v18, %v2469_v43  ;;  %v1065_v10 = vmul.f32 %v1064_v37, %v2676_v22  ;;  %v1044_v38 = vsel %vm1043_vm0, %v1497_v50, %v1040_v14 }
 0x3d3   :  { %v1073_v46 = vsel %vm1071_vm3, %v1773_v20, 128  ;;  %v1049_v22 = vsel %vm1046_vm1, %v1048_v36, %v1044_v38 }
 0x3d4   :  { %v1089_v12 = vshra.s32 %v1073_v46, 16  ;;  %v1050_v49 = vmul.f32 %v1049_v22, %v2674_v23  ;;  %v1088_v47 = vand.u32 65535, %v1073_v46 }
 0x3d6   :  { %v1091_v0 = vcvt.s32.f32 %v1089_v12  ;;  %v1090_v52 = vcvt.s32.f32 %v1088_v47 }
 0x3d8   :  { %1092 = vmin.xlane.f32.xlu1 %v1091_v0 }
 0x3e1   :  { %1109 = vperm.xlu2 %1488, %v1065_v10  }
 0x3f1   :  { %1104 = vperm.xlu1 %1487, %v1050_v49  }
 0x3f2   :  { %v1021_v32 = vpop.xlane.xlu2 %1020 }
 0x3f3   :  { %1498 = vlog2.f32 %v1021_v32 }
 0x3f9   :  { %v1499_v25 = vpop.eup %1498 }
 0x3fa   :  { %v1025_v24 = vmul.f32 0.6931472, %v1499_v25 }
 0x3fc   :  { %v1028_v35 = vadd.f32 %v1025_v24, %v2461_v59 }
 0x3fe   :  { %v1030_v13 = vsub.f32 %v2671_v19, %v1028_v35 }
 0x43c   :  { %v1023_v15 = vpop.xlane.xlu2 %1022 }
 0x43d   :  { %1500 = vlog2.f32 %v1023_v15 }
 0x440   :  { %v1079_v63 = vpop.xlane.xlu0 %1078 }
 0x441   :  { %vm1080_vm5 = vcmp.eq.f32.partialorder %v1077_v27, %v1079_v63  ;;  %v1085_v7 = vcvt.f32.s32 %v1079_v63 }
 0x442   :  { %v1081_v60 = vsel %vm1080_vm5, %v1076_v41, inf }
 0x443   :  { %1082 = vmin.xlane.f32.xlu2 %v1081_v60  ;;  %v1501_v16 = vpop.eup %1500  ;;  %v1086_v55 = vshll.u32 %v1085_v7, 16 }
 0x444   :  { %v1027_v23 = vmul.f32 0.6931472, %v1501_v16  ;;  %v1110_v2 = vpop.permute.xlu2 %1109 }
 0x445   :  { %v1113_v46 = vsel %vm2685_vm4, %v1110_v2, 0.0 }
 0x446   :  { %v1029_v30 = vadd.f32 %v1027_v23, %v2471_v57 }
 0x448   :  { %v1031_v17 = vsub.f32 %v2673_v6, %v1029_v30 }
 0x44b   :  { %v1093_v1 = vpop.xlane.xlu1 %1092 }
 0x44c   :  { %vm1094_vm13 = vcmp.eq.f32.partialorder %v1091_v0, %v1093_v1  ;;  %v1099_v45 = vcvt.f32.s32 %v1093_v1  ;;  %v1131_v0 = vsel %vm1129_vm9, %v2469_v43, 0.0 }
 0x44d   :  { %v1095_v18 = vsel %vm1094_vm13, %v1090_v52, inf }
 0x44e   :  { %1096 = vmin.xlane.f32.xlu0 %v1095_v18  ;;  %v1100_v8 = vshll.u32 %v1099_v45, 16 }
 0x45b   :  { %1122 = vperm.xlu2 %1488, %v1031_v17  }
 0x462   :  { %1117 = vperm.xlu0 %1489, %v1030_v13  }
 0x463   :  { %v1105_v5 = vpop.permute.xlu1 %1104 }
 0x464   :  { %v1112_v54 = vsel %vm2686_vm2, %v1105_v5, 0.0 }
 0x4b6   :  { %v1083_v51 = vpop.xlane.xlu2 %1082 }
 0x4b7   :  { %v1084_v48 = vcvt.f32.s32 %v1083_v51 }
 0x4b9   :  { %v1087_v27 = vadd.s32 %v1086_v55, %v1084_v48 }
 0x4bb   :  { %v1137_v57 = vsel %vm1136_vm8, %v1087_v27, 0   ;;  %vm1139_vm15 = vcmp.eq.s32.totalorder %v1773_v20, %v1087_v27 }
 0x4bc   :  { %v1141_v6 = vsel %vm1139_vm15, 1, %v1633_v61   ;;  %v1614_v37 = vmov %v1137_v57  }
 0x4bd   :  { %v1622_v33 = vmov %v1141_v6  }
 0x4be   :  { %v1123_v59 = vpop.permute.xlu2 %1122 }
 0x4bf   :  { %v1126_v44 = vsel %vm1114_vm10, %v1123_v59, 0.0 }
 0x4c0   :  { %v1128_v12 = vadd.f32 %v1126_v44, %v1113_v46 }
 0x4c1   :  { %v1097_v19 = vpop.xlane.xlu0 %1096 }
 0x4c2   :  { %v1098_v3 = vcvt.f32.s32 %v1097_v19  ;;  %v1133_v39 = vadd.f32 %v1131_v0, %v1128_v12 }
 0x4c4   :  { %v1101_v40 = vadd.s32 %v1100_v8, %v1098_v3  ;;  %1135 = vst [vmem:[%s2534_s7 + $0x8] sm:$0xff] %v1133_v39 }
 0x4c6   :  { %v1138_v9 = vsel %vm1136_vm8, %v1101_v40, 0   ;;  %vm1140_vm3 = vcmp.eq.s32.totalorder %v1773_v20, %v1101_v40 }
 0x4c7   :  { %v1142_v4 = vsel %vm1140_vm3, 1, %v1633_v61   ;;  %v1610_v61 = vmov %v1138_v9  }
 0x4c8   :  { %v1618_v10 = vmov %v1142_v4  }
 0x4d4   :  { %v1118_v58 = vpop.permute.xlu0 %1117 }
 0x4d5   :  { %v1125_v43 = vsel %vm1114_vm10, %v1118_v58, 0.0 }
 0x4d6   :  { %v1127_v53 = vadd.f32 %v1125_v43, %v1112_v54 }
 0x4d8   :  { %v1132_v62 = vadd.f32 %v1130_v34, %v1127_v53 }
 0x4da   :  { %1134 = vst [vmem:[%s2534_s7] sm:$0xff] %v1132_v62 }
 0x4db LB: > { %s1153_s23 = ssub.s32 7, %s1628_s22  ;;  %s1184_s7 = ssub.s32 6, %s1628_s22  ;;  %v1634_v52 = vmov 0   ;;  %s1628_s22 = sphi %s2511_s22, %s1148_s22   ;;  %v1624_v33 = vphi %v1622_v33, %v1191_v33   ;;  %v1620_v10 = vphi %v1618_v10, %v1192_v10   ;;  %v1616_v37 = vphi %v1614_v37, %v1615_v37   ;;  %v1612_v61 = vphi %v1610_v61, %v1611_v61  }
 0x4dc   : > { %s1290_s5 = sshll.u32 %s1153_s23, 4  ;;  %v1185_v63 = vstv %s1184_s7  ;;  %s1148_s22 = sadd.s32 1, %s1628_s22  }
 0x4dd   : > { %s1155_s24 = scalar_lea.vmem [#allocation2], %s1290_s5  ;;  %vm1186_vm7 = vcmp.eq.s32.totalorder %v1773_v20, %v1185_v63  ;;  %p1145_p1 = scmp.ge.s32.totalorder %s1148_s22, 7  }
 0x4de   : > { %v1156_v26 = vld [vmem:[%s1155_s24] sm:$0xff]  ;;  %v1157_v11 = vld [vmem:[%s1155_s24 + $0x8] sm:$0xff]  ;;  %vm2687_vm6 = vcmask (%p1145_p1), 64512  }
 0x4df   : > { %v1158_v50 = vmul.u32 %v1624_v33, %v1156_v26  ;;  %v1159_v42 = vmul.u32 %v1620_v10, %v1157_v11  ;;  %vm2688_vm11 = vmmov (%p1145_p1), %vm2687_vm6 }
 0x4e1   : > { %v1161_v29 = vshrl.u32 %v1158_v50, 16  ;;  %v1160_v56 = vand.u32 65535, %v1158_v50  ;;  %v1173_v21 = vshrl.u32 %v1159_v42, 16  ;;  %v1172_v36 = vand.u32 65535, %v1159_v42 }
 0x4e3   : > { %v1163_v28 = vcvt.s32.f32 %v1161_v29  ;;  %v1162_v14 = vcvt.s32.f32 %v1160_v56  ;;  %v1175_v38 = vcvt.s32.f32 %v1173_v21  ;;  %v1174_v31 = vcvt.s32.f32 %v1172_v36 }
 0x4e5   : > { %1166 = vadd.xlane.f32.xlu0 %v1163_v28  ;;  %1164 = vadd.xlane.f32.xlu1 %v1162_v14 }
 0x4ed   : > { %1178 = vadd.xlane.f32.xlu0 %v1175_v38  ;;  %1176 = vadd.xlane.f32.xlu1 %v1174_v31 }
 0x558   : > { %v1167_v22 = vpop.xlane.xlu0 %1166  ;;  %v1165_v49 = vpop.xlane.xlu1 %1164 }
 0x559   : > { %v1169_v41 = vcvt.f32.s32 %v1167_v22  ;;  %v1168_v60 = vcvt.f32.s32 %v1165_v49 }
 0x55b   : > { %v1170_v47 = vshll.u32 %v1169_v41, 16 }
 0x55d   : > { %v1171_v32 = vadd.s32 %v1170_v47, %v1168_v60 }
 0x55f   : > { %v1187_v1 = vsel %vm1186_vm7, %v1171_v32, %v1616_v37   ;;  %vm1189_vm12 = vcmp.eq.s32.totalorder %v1773_v20, %v1171_v32 }
 0x560   : > { %v1191_v33 = vsel %vm1189_vm12, 1, %v1634_v52   ;;  %v1179_v18 = vpop.xlane.xlu0 %1178  ;;  %v1177_v15 = vpop.xlane.xlu1 %1176  ;;  %v1615_v37 = vmov %v1187_v1   ;;  %1193 = vst.msk [vmem:[%s2535_s8] sm:$0xff] (%p1145_p1), %vm2687_vm6, %v1187_v1 }
 0x561   : > { %v1181_v25 = vcvt.f32.s32 %v1179_v18  ;;  %v1180_v16 = vcvt.f32.s32 %v1177_v15 }
 0x563   : > { %v1182_v24 = vshll.u32 %v1181_v25, 16 }
 0x564   :  { %1147 = sbr.rel (!%p1145_p1) target bundleno = 1243 (0x4db), region = 84 }
 0x565   : > { %v1183_v23 = vadd.s32 %v1182_v24, %v1180_v16 }
 0x567   : > { %v1188_v30 = vsel %vm1186_vm7, %v1183_v23, %v1612_v61   ;;  %vm1190_vm14 = vcmp.eq.s32.totalorder %v1773_v20, %v1183_v23 }
 0x568   : > { %v1192_v10 = vsel %vm1190_vm14, 1, %v1634_v52   ;;  %v1611_v61 = vmov %v1188_v30   ;;  %1194 = vst.msk [vmem:[%s2535_s8 + $0x8] sm:$0xff] (%p1145_p1), %vm2688_vm11, %v1188_v30 }

</bundles_post_ra>
